<compile_context>
chip_gen: v5e
topology: v5e:2x2
jax: 0.10.0
libtpu: 0.0.40
codegen_flags: <defaults>
</compile_context>

<pallas_src>
import functools

import jax
import jax.numpy as jnp
from jax import lax
from jax.experimental import pallas as pl
from jax.experimental.pallas import tpu as pltpu


def lstm_kernel(
    xproj_ref,           # (TB, 4*HID) precomputed x-projection (+bias) for this block
    wh_ref,              # (HID, 4*HID) fused recurrent weights, resident
    h0_ref, c0_ref,      # (1, HID) initial state
    out_ref,             # (TB, HID) per-step hidden outputs for this block
    hT_ref, cT_ref,      # (1, HID) final state
    h_sc, c_sc,          # (1, HID) VMEM scratch (only used when n_blocks > 1)
    *, tb, hid, n_blocks, t_valid,
):
    blk = pl.program_id(0)
    mask_tail = (n_blocks * tb) > t_valid   # static: padded tail present?

    if n_blocks == 1:
        # Single grid step: carry h/c purely in registers, no scratch traffic.
        h = h0_ref[...]
        c = c0_ref[...]
    else:
        @pl.when(blk == 0)
        def _init():
            h_sc[...] = h0_ref[...]
            c_sc[...] = c0_ref[...]
        h = h_sc[...]
        c = c_sc[...]

    wh = wh_ref[...]                      # (HID, 4*HID), hoisted out of the loop

    def step(tt, carry):
        h, c = carry
        # One fused MXU matmul per step; gate layout is [i | f | o | g].
        gates = xproj_ref[pl.ds(tt, 1), :] + jnp.dot(
            h, wh, preferred_element_type=jnp.float32)          # (1, 4*HID)
        # Two EUP pushes for the gates: sigmoid over the [i|f|o] slab, tanh
        # over the g slab; slice *after* the activations.
        sig = jax.nn.sigmoid(gates[:, :3 * hid])                # (1, 3*HID)
        g = jnp.tanh(gates[:, 3 * hid:])                        # (1, HID)
        i = sig[:, 0 * hid:1 * hid]
        f = sig[:, 1 * hid:2 * hid]
        o = sig[:, 2 * hid:3 * hid]
        c_new = f * c + i * g
        h_new = o * jnp.tanh(c_new)
        if mask_tail:
            valid = (blk * tb + tt) < t_valid
            h_new = jnp.where(valid, h_new, h)
            c_new = jnp.where(valid, c_new, c)
        out_ref[pl.ds(tt, 1), :] = h_new   # staged in the VMEM output block
        return h_new, c_new

    unroll = True if tb <= 32 else 8      # keep vreg live ranges bounded
    h, c = lax.fori_loop(0, tb, step, (h, c), unroll=unroll)

    if n_blocks == 1:
        hT_ref[...] = h
        cT_ref[...] = c
    else:
        h_sc[...] = h
        c_sc[...] = c

        @pl.when(blk == n_blocks - 1)
        def _final():
            hT_ref[...] = h
            cT_ref[...] = c


def lstm_forward(x_seq, h0, c0, params, *, inp_size, hid_size, max_time_block=512):
    """x_seq: (T, INP) f32; h0, c0: (HID,) f32 or None (-> zeros, as in the module).

    Returns (out, (h_T, c_T)) with out: (T, HID), h_T/c_T: (HID,).
    """
    T = x_seq.shape[0]
    if h0 is None:
        h0 = jnp.zeros((hid_size,), jnp.float32)
    if c0 is None:
        c0 = jnp.zeros((hid_size,), jnp.float32)

    # --- Fuse gate weights along the output axis: [i | f | o | g] -----------
    # nn.Linear over concatenated [x; h]: y = x @ W[:, :INP].T + h @ W[:, INP:].T + b
    wx_parts, wh_parts, b_parts = [], [], []
    for name in ("Wi", "Wf", "Wo", "Wg"):
        w = params[f"{name}_w"]                       # (HID, INP+HID)
        wx_parts.append(w[:, :inp_size].T)            # (INP, HID)
        wh_parts.append(w[:, inp_size:].T)            # (HID, HID)
        b_parts.append(params[f"{name}_b"])           # (HID,)
    wx_f = jnp.concatenate(wx_parts, axis=1).astype(jnp.float32)   # (INP, 4*HID)
    wh_f = jnp.concatenate(wh_parts, axis=1).astype(jnp.float32)   # (HID, 4*HID)
    b_f = jnp.concatenate(b_parts, axis=0).astype(jnp.float32)     # (4*HID,)

    # --- Hoisted input projection (bias folded in) ---------------------------
    # HIGHEST keeps the x-projection numerically aligned with the f32
    # reference; at small T*INP it is not perf-relevant.  TODO(synk): drop to
    # DEFAULT / bf16-with-f32-acc (or fuse this matmul into the kernel) when
    # T*INP gets large enough to be HBM/MXU-visible.
    xproj = jnp.dot(x_seq.astype(jnp.float32), wx_f,
                    precision=lax.Precision.HIGHEST) + b_f          # (T, 4*HID)

    # --- Time blocking: collapse to a single grid step whenever it fits ------
    if T <= max_time_block:
        tb, n_blocks, t_pad = T, 1, T          # block == full array -> always legal
    else:
        tb = max(8, (max_time_block // 8) * 8)  # sublane-aligned block
        n_blocks = pl.cdiv(T, tb)
        t_pad = n_blocks * tb
        if t_pad != T:
            xproj = jnp.pad(xproj, ((0, t_pad - T), (0, 0)))   # masked tail in-kernel

    h0_2 = h0.reshape(1, hid_size).astype(jnp.float32)
    c0_2 = c0.reshape(1, hid_size).astype(jnp.float32)

    grid_spec = pltpu.PrefetchScalarGridSpec(
        num_scalar_prefetch=0,
        grid=(n_blocks,),
        in_specs=[
            pl.BlockSpec((tb, 4 * hid_size), lambda t: (t, 0)),     # xproj block
            pl.BlockSpec((hid_size, 4 * hid_size), lambda t: (0, 0)),  # Wh (resident)
            pl.BlockSpec((1, hid_size), lambda t: (0, 0)),          # h0
            pl.BlockSpec((1, hid_size), lambda t: (0, 0)),          # c0
        ],
        out_specs=[
            pl.BlockSpec((tb, hid_size), lambda t: (t, 0)),         # h_t slab per block
            pl.BlockSpec((1, hid_size), lambda t: (0, 0)),          # final h
            pl.BlockSpec((1, hid_size), lambda t: (0, 0)),          # final c
        ],
        scratch_shapes=[
            pltpu.VMEM((1, hid_size), jnp.float32),
            pltpu.VMEM((1, hid_size), jnp.float32),
        ],
    )

    kernel = functools.partial(
        lstm_kernel, tb=tb, hid=hid_size, n_blocks=n_blocks, t_valid=T)

    out, hT, cT = pl.pallas_call(
        kernel,
        grid_spec=grid_spec,
        out_shape=(
            jax.ShapeDtypeStruct((t_pad, hid_size), jnp.float32),
            jax.ShapeDtypeStruct((1, hid_size), jnp.float32),
            jax.ShapeDtypeStruct((1, hid_size), jnp.float32),
        ),
        compiler_params=pltpu.CompilerParams(
            dimension_semantics=("arbitrary",)),       # sequential recurrence
    )(xproj, wh_f, h0_2, c0_2)

    return out[:T], (hT.reshape(hid_size), cT.reshape(hid_size))


def lstm_reference(x_seq, h0, c0, params, *, inp_size, hid_size):
    """Pure-JAX reference mirroring the PyTorch module exactly."""
    def linear(w, b, v):
        return jnp.dot(v, w.T, precision=lax.Precision.HIGHEST) + b

    h, c = h0, c0
    outs = []
    for x in x_seq:
        stacked = jnp.concatenate([x, h], axis=0)
        i = jax.nn.sigmoid(linear(params["Wi_w"], params["Wi_b"], stacked))
        f = jax.nn.sigmoid(linear(params["Wf_w"], params["Wf_b"], stacked))
        o = jax.nn.sigmoid(linear(params["Wo_w"], params["Wo_b"], stacked))
        g = jnp.tanh(linear(params["Wg_w"], params["Wg_b"], stacked))
        c = f * c + i * g
        h = o * jnp.tanh(c)
        outs.append(h)
    return jnp.stack(outs), (h, c)


def init_params(key, inp_size, hid_size):
    """Deterministic init matching nn.Linear's default uniform(-k, k)."""
    fan_in = inp_size + hid_size
    bound = 1.0 / jnp.sqrt(jnp.float32(fan_in))
    params = {}
    for name in ("Wi", "Wf", "Wo", "Wg"):
        key, kw, kb = jax.random.split(key, 3)
        params[f"{name}_w"] = jax.random.uniform(
            kw, (hid_size, fan_in), jnp.float32, -bound, bound)
        params[f"{name}_b"] = jax.random.uniform(
            kb, (hid_size,), jnp.float32, -bound, bound)
    return params


if __name__ == "__main__":
    INP, HID = 32, 32   # 4*HID = 128 -> one lane-aligned gate row per step

    key = jax.random.PRNGKey(0)
    key, kx1, kx2, kh, kc = jax.random.split(key, 5)
    params = init_params(key, INP, HID)

    h0 = jax.random.normal(kh, (HID,), jnp.float32)
    c0 = jax.random.normal(kc, (HID,), jnp.float32)

    # --- Test 1: moderate T -> grid collapses to a single step ---------------
    T1 = 16
    x1 = jax.random.normal(kx1, (T1, INP), jnp.float32)
    fwd1 = jax.jit(functools.partial(lstm_forward, inp_size=INP, hid_size=HID))
    out1, (h1, c1) = fwd1(x1, h0, c0, params)
    jax.block_until_ready((out1, h1, c1))

    r_out1, (r_h1, r_c1) = lstm_reference(x1, h0, c0, params,
                                          inp_size=INP, hid_size=HID)
    assert jnp.allclose(out1, r_out1, atol=1e-5, rtol=1e-5)
    assert jnp.allclose(h1, r_h1, atol=1e-5, rtol=1e-5)
    assert jnp.allclose(c1, r_c1, atol=1e-5, rtol=1e-5)

    # --- Test 2: non-divisible T with forced blocking -> padded+masked tail --
    T2 = 20
    x2 = jax.random.normal(kx2, (T2, INP), jnp.float32)
    fwd2 = jax.jit(functools.partial(lstm_forward, inp_size=INP, hid_size=HID,
                                     max_time_block=8))
    out2, (h2, c2) = fwd2(x2, h0, c0, params)
    jax.block_until_ready((out2, h2, c2))

    r_out2, (r_h2, r_c2) = lstm_reference(x2, h0, c0, params,
                                          inp_size=INP, hid_size=HID)
    assert jnp.allclose(out2, r_out2, atol=1e-5, rtol=1e-5)
    assert jnp.allclose(h2, r_h2, atol=1e-5, rtol=1e-5)
    assert jnp.allclose(c2, r_c2, atol=1e-5, rtol=1e-5)

    print("KERNEL_OK")
</pallas_src>

<mosaic_0001>
module attributes {stable_mosaic.version = 11 : i64} {
  func.func @lstm_kernel(%arg0: i32, %arg1: memref<16x128xf32, #tpu.memory_space<vmem>>, %arg2: memref<32x128xf32, #tpu.memory_space<vmem>>, %arg3: memref<1x32xf32, #tpu.memory_space<vmem>>, %arg4: memref<1x32xf32, #tpu.memory_space<vmem>>, %arg5: memref<16x32xf32, #tpu.memory_space<vmem>>, %arg6: memref<1x32xf32, #tpu.memory_space<vmem>>, %arg7: memref<1x32xf32, #tpu.memory_space<vmem>>, %arg8: memref<1x32xf32, #tpu.memory_space<vmem>>, %arg9: memref<1x32xf32, #tpu.memory_space<vmem>>) attributes {dimension_semantics = [#tpu.dimension_semantics<arbitrary>], iteration_bounds = array<i64: 1>, scalar_prefetch = 0 : i64, scratch_operands = 2 : i64, tpu.core_type = #tpu.core_type<tc>, window_params = [{transform_indices = @transform_0, window_bounds = array<i64: 16, 128>}, {pipeline_mode = #tpu.pipeline_mode<synchronous>, transform_indices = @transform_1, window_bounds = array<i64: 32, 128>}, {pipeline_mode = #tpu.pipeline_mode<synchronous>, transform_indices = @transform_2, window_bounds = array<i64: 1, 32>}, {pipeline_mode = #tpu.pipeline_mode<synchronous>, transform_indices = @transform_3, window_bounds = array<i64: 1, 32>}, {transform_indices = @transform_4, window_bounds = array<i64: 16, 32>}, {pipeline_mode = #tpu.pipeline_mode<synchronous>, transform_indices = @transform_5, window_bounds = array<i64: 1, 32>}, {pipeline_mode = #tpu.pipeline_mode<synchronous>, transform_indices = @transform_6, window_bounds = array<i64: 1, 32>}]} {
    %c0 = arith.constant 0 : index
    %c0_0 = arith.constant 0 : index
    %0 = vector.load %arg3[%c0, %c0_0] : memref<1x32xf32, #tpu.memory_space<vmem>>, vector<1x32xf32>
    %c0_1 = arith.constant 0 : index
    %c0_2 = arith.constant 0 : index
    %1 = vector.load %arg4[%c0_1, %c0_2] : memref<1x32xf32, #tpu.memory_space<vmem>>, vector<1x32xf32>
    %c0_3 = arith.constant 0 : index
    %c0_4 = arith.constant 0 : index
    %2 = vector.load %arg2[%c0_3, %c0_4] : memref<32x128xf32, #tpu.memory_space<vmem>>, vector<32x128xf32>
    %c0_i32 = arith.constant 0 : i32
    %3 = arith.index_cast %c0_i32 : i32 to index
    %c0_5 = arith.constant 0 : index
    %4 = vector.load %arg1[%3, %c0_5] : memref<16x128xf32, #tpu.memory_space<vmem>>, vector<1x128xf32>
    %cst = arith.constant dense<0.000000e+00> : vector<1x128xf32>
    %5 = tpu.matmul %0, %2, %cst {dimension_numbers = #tpu.dot_dimension_numbers<[1], [0], [0], [1], [0, 0, 1, 1], [], []>} : vector<1x32xf32>, vector<32x128xf32>, vector<1x128xf32> -> vector<1x128xf32>
    %6 = arith.addf %4, %5 : vector<1x128xf32>
    %7 = vector.extract_strided_slice %6 {offsets = [0, 0], sizes = [1, 96], strides = [1, 1]} : vector<1x128xf32> to vector<1x96xf32>
    %8 = arith.negf %7 : vector<1x96xf32>
    %9 = math.exp %8 : vector<1x96xf32>
    %cst_6 = arith.constant 1.000000e+00 : f32
    %10 = vector.broadcast %cst_6 : f32 to vector<1x96xf32>
    %11 = arith.addf %10, %9 : vector<1x96xf32>
    %12 = arith.divf %10, %11 : vector<1x96xf32>
    %13 = vector.extract_strided_slice %6 {offsets = [0, 96], sizes = [1, 32], strides = [1, 1]} : vector<1x128xf32> to vector<1x32xf32>
    %14 = math.tanh %13 : vector<1x32xf32>
    %15 = vector.extract_strided_slice %12 {offsets = [0, 0], sizes = [1, 32], strides = [1, 1]} : vector<1x96xf32> to vector<1x32xf32>
    %16 = vector.extract_strided_slice %12 {offsets = [0, 32], sizes = [1, 32], strides = [1, 1]} : vector<1x96xf32> to vector<1x32xf32>
    %17 = vector.extract_strided_slice %12 {offsets = [0, 64], sizes = [1, 32], strides = [1, 1]} : vector<1x96xf32> to vector<1x32xf32>
    %18 = arith.mulf %16, %1 : vector<1x32xf32>
    %19 = arith.mulf %15, %14 : vector<1x32xf32>
    %20 = arith.addf %18, %19 : vector<1x32xf32>
    %21 = math.tanh %20 : vector<1x32xf32>
    %22 = arith.mulf %17, %21 : vector<1x32xf32>
    %23 = arith.index_cast %c0_i32 : i32 to index
    %c0_7 = arith.constant 0 : index
    %24 = vector.load %arg5[%23, %c0_7] : memref<16x32xf32, #tpu.memory_space<vmem>>, vector<1x32xf32>
    tpu.vector_store %arg5[%23, %c0_7], %22 {strides = array<i32>} : memref<16x32xf32, #tpu.memory_space<vmem>>, vector<1x32xf32>,
    %c1_i32 = arith.constant 1 : i32
    %25 = arith.index_cast %c1_i32 : i32 to index
    %c0_8 = arith.constant 0 : index
    %26 = vector.load %arg1[%25, %c0_8] : memref<16x128xf32, #tpu.memory_space<vmem>>, vector<1x128xf32>
    %cst_9 = arith.constant dense<0.000000e+00> : vector<1x128xf32>
    %27 = tpu.matmul %22, %2, %cst_9 {dimension_numbers = #tpu.dot_dimension_numbers<[1], [0], [0], [1], [0, 0, 1, 1], [], []>} : vector<1x32xf32>, vector<32x128xf32>, vector<1x128xf32> -> vector<1x128xf32>
    %28 = arith.addf %26, %27 : vector<1x128xf32>
    %29 = vector.extract_strided_slice %28 {offsets = [0, 0], sizes = [1, 96], strides = [1, 1]} : vector<1x128xf32> to vector<1x96xf32>
    %30 = arith.negf %29 : vector<1x96xf32>
    %31 = math.exp %30 : vector<1x96xf32>
    %cst_10 = arith.constant 1.000000e+00 : f32
    %32 = vector.broadcast %cst_10 : f32 to vector<1x96xf32>
    %33 = arith.addf %32, %31 : vector<1x96xf32>
    %34 = arith.divf %32, %33 : vector<1x96xf32>
    %35 = vector.extract_strided_slice %28 {offsets = [0, 96], sizes = [1, 32], strides = [1, 1]} : vector<1x128xf32> to vector<1x32xf32>
    %36 = math.tanh %35 : vector<1x32xf32>
    %37 = vector.extract_strided_slice %34 {offsets = [0, 0], sizes = [1, 32], strides = [1, 1]} : vector<1x96xf32> to vector<1x32xf32>
    %38 = vector.extract_strided_slice %34 {offsets = [0, 32], sizes = [1, 32], strides = [1, 1]} : vector<1x96xf32> to vector<1x32xf32>
    %39 = vector.extract_strided_slice %34 {offsets = [0, 64], sizes = [1, 32], strides = [1, 1]} : vector<1x96xf32> to vector<1x32xf32>
    %40 = arith.mulf %38, %20 : vector<1x32xf32>
    %41 = arith.mulf %37, %36 : vector<1x32xf32>
    %42 = arith.addf %40, %41 : vector<1x32xf32>
    %43 = math.tanh %42 : vector<1x32xf32>
    %44 = arith.mulf %39, %43 : vector<1x32xf32>
    %45 = arith.index_cast %c1_i32 : i32 to index
    %c0_11 = arith.constant 0 : index
    %46 = vector.load %arg5[%45, %c0_11] : memref<16x32xf32, #tpu.memory_space<vmem>>, vector<1x32xf32>
    tpu.vector_store %arg5[%45, %c0_11], %44 {strides = array<i32>} : memref<16x32xf32, #tpu.memory_space<vmem>>, vector<1x32xf32>,
    %c2_i32 = arith.constant 2 : i32
    %47 = arith.index_cast %c2_i32 : i32 to index
    %c0_12 = arith.constant 0 : index
    %48 = vector.load %arg1[%47, %c0_12] : memref<16x128xf32, #tpu.memory_space<vmem>>, vector<1x128xf32>
    %cst_13 = arith.constant dense<0.000000e+00> : vector<1x128xf32>
    %49 = tpu.matmul %44, %2, %cst_13 {dimension_numbers = #tpu.dot_dimension_numbers<[1], [0], [0], [1], [0, 0, 1, 1], [], []>} : vector<1x32xf32>, vector<32x128xf32>, vector<1x128xf32> -> vector<1x128xf32>
    %50 = arith.addf %48, %49 : vector<1x128xf32>
    %51 = vector.extract_strided_slice %50 {offsets = [0, 0], sizes = [1, 96], strides = [1, 1]} : vector<1x128xf32> to vector<1x96xf32>
    %52 = arith.negf %51 : vector<1x96xf32>
    %53 = math.exp %52 : vector<1x96xf32>
    %cst_14 = arith.constant 1.000000e+00 : f32
    %54 = vector.broadcast %cst_14 : f32 to vector<1x96xf32>
    %55 = arith.addf %54, %53 : vector<1x96xf32>
    %56 = arith.divf %54, %55 : vector<1x96xf32>
    %57 = vector.extract_strided_slice %50 {offsets = [0, 96], sizes = [1, 32], strides = [1, 1]} : vector<1x128xf32> to vector<1x32xf32>
    %58 = math.tanh %57 : vector<1x32xf32>
    %59 = vector.extract_strided_slice %56 {offsets = [0, 0], sizes = [1, 32], strides = [1, 1]} : vector<1x96xf32> to vector<1x32xf32>
    %60 = vector.extract_strided_slice %56 {offsets = [0, 32], sizes = [1, 32], strides = [1, 1]} : vector<1x96xf32> to vector<1x32xf32>
    %61 = vector.extract_strided_slice %56 {offsets = [0, 64], sizes = [1, 32], strides = [1, 1]} : vector<1x96xf32> to vector<1x32xf32>
    %62 = arith.mulf %60, %42 : vector<1x32xf32>
    %63 = arith.mulf %59, %58 : vector<1x32xf32>
    %64 = arith.addf %62, %63 : vector<1x32xf32>
    %65 = math.tanh %64 : vector<1x32xf32>
    %66 = arith.mulf %61, %65 : vector<1x32xf32>
    %67 = arith.index_cast %c2_i32 : i32 to index
    %c0_15 = arith.constant 0 : index
    %68 = vector.load %arg5[%67, %c0_15] : memref<16x32xf32, #tpu.memory_space<vmem>>, vector<1x32xf32>
    tpu.vector_store %arg5[%67, %c0_15], %66 {strides = array<i32>} : memref<16x32xf32, #tpu.memory_space<vmem>>, vector<1x32xf32>,
    %c3_i32 = arith.constant 3 : i32
    %69 = arith.index_cast %c3_i32 : i32 to index
    %c0_16 = arith.constant 0 : index
    %70 = vector.load %arg1[%69, %c0_16] : memref<16x128xf32, #tpu.memory_space<vmem>>, vector<1x128xf32>
    %cst_17 = arith.constant dense<0.000000e+00> : vector<1x128xf32>
    %71 = tpu.matmul %66, %2, %cst_17 {dimension_numbers = #tpu.dot_dimension_numbers<[1], [0], [0], [1], [0, 0, 1, 1], [], []>} : vector<1x32xf32>, vector<32x128xf32>, vector<1x128xf32> -> vector<1x128xf32>
    %72 = arith.addf %70, %71 : vector<1x128xf32>
    %73 = vector.extract_strided_slice %72 {offsets = [0, 0], sizes = [1, 96], strides = [1, 1]} : vector<1x128xf32> to vector<1x96xf32>
    %74 = arith.negf %73 : vector<1x96xf32>
    %75 = math.exp %74 : vector<1x96xf32>
    %cst_18 = arith.constant 1.000000e+00 : f32
    %76 = vector.broadcast %cst_18 : f32 to vector<1x96xf32>
    %77 = arith.addf %76, %75 : vector<1x96xf32>
    %78 = arith.divf %76, %77 : vector<1x96xf32>
    %79 = vector.extract_strided_slice %72 {offsets = [0, 96], sizes = [1, 32], strides = [1, 1]} : vector<1x128xf32> to vector<1x32xf32>
    %80 = math.tanh %79 : vector<1x32xf32>
    %81 = vector.extract_strided_slice %78 {offsets = [0, 0], sizes = [1, 32], strides = [1, 1]} : vector<1x96xf32> to vector<1x32xf32>
    %82 = vector.extract_strided_slice %78 {offsets = [0, 32], sizes = [1, 32], strides = [1, 1]} : vector<1x96xf32> to vector<1x32xf32>
    %83 = vector.extract_strided_slice %78 {offsets = [0, 64], sizes = [1, 32], strides = [1, 1]} : vector<1x96xf32> to vector<1x32xf32>
    %84 = arith.mulf %82, %64 : vector<1x32xf32>
    %85 = arith.mulf %81, %80 : vector<1x32xf32>
    %86 = arith.addf %84, %85 : vector<1x32xf32>
    %87 = math.tanh %86 : vector<1x32xf32>
    %88 = arith.mulf %83, %87 : vector<1x32xf32>
    %89 = arith.index_cast %c3_i32 : i32 to index
    %c0_19 = arith.constant 0 : index
    %90 = vector.load %arg5[%89, %c0_19] : memref<16x32xf32, #tpu.memory_space<vmem>>, vector<1x32xf32>
    tpu.vector_store %arg5[%89, %c0_19], %88 {strides = array<i32>} : memref<16x32xf32, #tpu.memory_space<vmem>>, vector<1x32xf32>,
    %c4_i32 = arith.constant 4 : i32
    %91 = arith.index_cast %c4_i32 : i32 to index
    %c0_20 = arith.constant 0 : index
    %92 = vector.load %arg1[%91, %c0_20] : memref<16x128xf32, #tpu.memory_space<vmem>>, vector<1x128xf32>
    %cst_21 = arith.constant dense<0.000000e+00> : vector<1x128xf32>
    %93 = tpu.matmul %88, %2, %cst_21 {dimension_numbers = #tpu.dot_dimension_numbers<[1], [0], [0], [1], [0, 0, 1, 1], [], []>} : vector<1x32xf32>, vector<32x128xf32>, vector<1x128xf32> -> vector<1x128xf32>
    %94 = arith.addf %92, %93 : vector<1x128xf32>
    %95 = vector.extract_strided_slice %94 {offsets = [0, 0], sizes = [1, 96], strides = [1, 1]} : vector<1x128xf32> to vector<1x96xf32>
    %96 = arith.negf %95 : vector<1x96xf32>
    %97 = math.exp %96 : vector<1x96xf32>
    %cst_22 = arith.constant 1.000000e+00 : f32
    %98 = vector.broadcast %cst_22 : f32 to vector<1x96xf32>
    %99 = arith.addf %98, %97 : vector<1x96xf32>
    %100 = arith.divf %98, %99 : vector<1x96xf32>
    %101 = vector.extract_strided_slice %94 {offsets = [0, 96], sizes = [1, 32], strides = [1, 1]} : vector<1x128xf32> to vector<1x32xf32>
    %102 = math.tanh %101 : vector<1x32xf32>
    %103 = vector.extract_strided_slice %100 {offsets = [0, 0], sizes = [1, 32], strides = [1, 1]} : vector<1x96xf32> to vector<1x32xf32>
    %104 = vector.extract_strided_slice %100 {offsets = [0, 32], sizes = [1, 32], strides = [1, 1]} : vector<1x96xf32> to vector<1x32xf32>
    %105 = vector.extract_strided_slice %100 {offsets = [0, 64], sizes = [1, 32], strides = [1, 1]} : vector<1x96xf32> to vector<1x32xf32>
    %106 = arith.mulf %104, %86 : vector<1x32xf32>
    %107 = arith.mulf %103, %102 : vector<1x32xf32>
    %108 = arith.addf %106, %107 : vector<1x32xf32>
    %109 = math.tanh %108 : vector<1x32xf32>
    %110 = arith.mulf %105, %109 : vector<1x32xf32>
    %111 = arith.index_cast %c4_i32 : i32 to index
    %c0_23 = arith.constant 0 : index
    %112 = vector.load %arg5[%111, %c0_23] : memref<16x32xf32, #tpu.memory_space<vmem>>, vector<1x32xf32>
    tpu.vector_store %arg5[%111, %c0_23], %110 {strides = array<i32>} : memref<16x32xf32, #tpu.memory_space<vmem>>, vector<1x32xf32>,
    %c5_i32 = arith.constant 5 : i32
    %113 = arith.index_cast %c5_i32 : i32 to index
    %c0_24 = arith.constant 0 : index
    %114 = vector.load %arg1[%113, %c0_24] : memref<16x128xf32, #tpu.memory_space<vmem>>, vector<1x128xf32>
    %cst_25 = arith.constant dense<0.000000e+00> : vector<1x128xf32>
    %115 = tpu.matmul %110, %2, %cst_25 {dimension_numbers = #tpu.dot_dimension_numbers<[1], [0], [0], [1], [0, 0, 1, 1], [], []>} : vector<1x32xf32>, vector<32x128xf32>, vector<1x128xf32> -> vector<1x128xf32>
    %116 = arith.addf %114, %115 : vector<1x128xf32>
    %117 = vector.extract_strided_slice %116 {offsets = [0, 0], sizes = [1, 96], strides = [1, 1]} : vector<1x128xf32> to vector<1x96xf32>
    %118 = arith.negf %117 : vector<1x96xf32>
    %119 = math.exp %118 : vector<1x96xf32>
    %cst_26 = arith.constant 1.000000e+00 : f32
    %120 = vector.broadcast %cst_26 : f32 to vector<1x96xf32>
    %121 = arith.addf %120, %119 : vector<1x96xf32>
    %122 = arith.divf %120, %121 : vector<1x96xf32>
    %123 = vector.extract_strided_slice %116 {offsets = [0, 96], sizes = [1, 32], strides = [1, 1]} : vector<1x128xf32> to vector<1x32xf32>
    %124 = math.tanh %123 : vector<1x32xf32>
    %125 = vector.extract_strided_slice %122 {offsets = [0, 0], sizes = [1, 32], strides = [1, 1]} : vector<1x96xf32> to vector<1x32xf32>
    %126 = vector.extract_strided_slice %122 {offsets = [0, 32], sizes = [1, 32], strides = [1, 1]} : vector<1x96xf32> to vector<1x32xf32>
    %127 = vector.extract_strided_slice %122 {offsets = [0, 64], sizes = [1, 32], strides = [1, 1]} : vector<1x96xf32> to vector<1x32xf32>
    %128 = arith.mulf %126, %108 : vector<1x32xf32>
    %129 = arith.mulf %125, %124 : vector<1x32xf32>
    %130 = arith.addf %128, %129 : vector<1x32xf32>
    %131 = math.tanh %130 : vector<1x32xf32>
    %132 = arith.mulf %127, %131 : vector<1x32xf32>
    %133 = arith.index_cast %c5_i32 : i32 to index
    %c0_27 = arith.constant 0 : index
    %134 = vector.load %arg5[%133, %c0_27] : memref<16x32xf32, #tpu.memory_space<vmem>>, vector<1x32xf32>
    tpu.vector_store %arg5[%133, %c0_27], %132 {strides = array<i32>} : memref<16x32xf32, #tpu.memory_space<vmem>>, vector<1x32xf32>,
    %c6_i32 = arith.constant 6 : i32
    %135 = arith.index_cast %c6_i32 : i32 to index
    %c0_28 = arith.constant 0 : index
    %136 = vector.load %arg1[%135, %c0_28] : memref<16x128xf32, #tpu.memory_space<vmem>>, vector<1x128xf32>
    %cst_29 = arith.constant dense<0.000000e+00> : vector<1x128xf32>
    %137 = tpu.matmul %132, %2, %cst_29 {dimension_numbers = #tpu.dot_dimension_numbers<[1], [0], [0], [1], [0, 0, 1, 1], [], []>} : vector<1x32xf32>, vector<32x128xf32>, vector<1x128xf32> -> vector<1x128xf32>
    %138 = arith.addf %136, %137 : vector<1x128xf32>
    %139 = vector.extract_strided_slice %138 {offsets = [0, 0], sizes = [1, 96], strides = [1, 1]} : vector<1x128xf32> to vector<1x96xf32>
    %140 = arith.negf %139 : vector<1x96xf32>
    %141 = math.exp %140 : vector<1x96xf32>
    %cst_30 = arith.constant 1.000000e+00 : f32
    %142 = vector.broadcast %cst_30 : f32 to vector<1x96xf32>
    %143 = arith.addf %142, %141 : vector<1x96xf32>
    %144 = arith.divf %142, %143 : vector<1x96xf32>
    %145 = vector.extract_strided_slice %138 {offsets = [0, 96], sizes = [1, 32], strides = [1, 1]} : vector<1x128xf32> to vector<1x32xf32>
    %146 = math.tanh %145 : vector<1x32xf32>
    %147 = vector.extract_strided_slice %144 {offsets = [0, 0], sizes = [1, 32], strides = [1, 1]} : vector<1x96xf32> to vector<1x32xf32>
    %148 = vector.extract_strided_slice %144 {offsets = [0, 32], sizes = [1, 32], strides = [1, 1]} : vector<1x96xf32> to vector<1x32xf32>
    %149 = vector.extract_strided_slice %144 {offsets = [0, 64], sizes = [1, 32], strides = [1, 1]} : vector<1x96xf32> to vector<1x32xf32>
    %150 = arith.mulf %148, %130 : vector<1x32xf32>
    %151 = arith.mulf %147, %146 : vector<1x32xf32>
    %152 = arith.addf %150, %151 : vector<1x32xf32>
    %153 = math.tanh %152 : vector<1x32xf32>
    %154 = arith.mulf %149, %153 : vector<1x32xf32>
    %155 = arith.index_cast %c6_i32 : i32 to index
    %c0_31 = arith.constant 0 : index
    %156 = vector.load %arg5[%155, %c0_31] : memref<16x32xf32, #tpu.memory_space<vmem>>, vector<1x32xf32>
    tpu.vector_store %arg5[%155, %c0_31], %154 {strides = array<i32>} : memref<16x32xf32, #tpu.memory_space<vmem>>, vector<1x32xf32>,
    %c7_i32 = arith.constant 7 : i32
    %157 = arith.index_cast %c7_i32 : i32 to index
    %c0_32 = arith.constant 0 : index
    %158 = vector.load %arg1[%157, %c0_32] : memref<16x128xf32, #tpu.memory_space<vmem>>, vector<1x128xf32>
    %cst_33 = arith.constant dense<0.000000e+00> : vector<1x128xf32>
    %159 = tpu.matmul %154, %2, %cst_33 {dimension_numbers = #tpu.dot_dimension_numbers<[1], [0], [0], [1], [0, 0, 1, 1], [], []>} : vector<1x32xf32>, vector<32x128xf32>, vector<1x128xf32> -> vector<1x128xf32>
    %160 = arith.addf %158, %159 : vector<1x128xf32>
    %161 = vector.extract_strided_slice %160 {offsets = [0, 0], sizes = [1, 96], strides = [1, 1]} : vector<1x128xf32> to vector<1x96xf32>
    %162 = arith.negf %161 : vector<1x96xf32>
    %163 = math.exp %162 : vector<1x96xf32>
    %cst_34 = arith.constant 1.000000e+00 : f32
    %164 = vector.broadcast %cst_34 : f32 to vector<1x96xf32>
    %165 = arith.addf %164, %163 : vector<1x96xf32>
    %166 = arith.divf %164, %165 : vector<1x96xf32>
    %167 = vector.extract_strided_slice %160 {offsets = [0, 96], sizes = [1, 32], strides = [1, 1]} : vector<1x128xf32> to vector<1x32xf32>
    %168 = math.tanh %167 : vector<1x32xf32>
    %169 = vector.extract_strided_slice %166 {offsets = [0, 0], sizes = [1, 32], strides = [1, 1]} : vector<1x96xf32> to vector<1x32xf32>
    %170 = vector.extract_strided_slice %166 {offsets = [0, 32], sizes = [1, 32], strides = [1, 1]} : vector<1x96xf32> to vector<1x32xf32>
    %171 = vector.extract_strided_slice %166 {offsets = [0, 64], sizes = [1, 32], strides = [1, 1]} : vector<1x96xf32> to vector<1x32xf32>
    %172 = arith.mulf %170, %152 : vector<1x32xf32>
    %173 = arith.mulf %169, %168 : vector<1x32xf32>
    %174 = arith.addf %172, %173 : vector<1x32xf32>
    %175 = math.tanh %174 : vector<1x32xf32>
    %176 = arith.mulf %171, %175 : vector<1x32xf32>
    %177 = arith.index_cast %c7_i32 : i32 to index
    %c0_35 = arith.constant 0 : index
    %178 = vector.load %arg5[%177, %c0_35] : memref<16x32xf32, #tpu.memory_space<vmem>>, vector<1x32xf32>
    tpu.vector_store %arg5[%177, %c0_35], %176 {strides = array<i32>} : memref<16x32xf32, #tpu.memory_space<vmem>>, vector<1x32xf32>,
    %c8_i32 = arith.constant 8 : i32
    %179 = arith.index_cast %c8_i32 : i32 to index
    %c0_36 = arith.constant 0 : index
    %180 = vector.load %arg1[%179, %c0_36] : memref<16x128xf32, #tpu.memory_space<vmem>>, vector<1x128xf32>
    %cst_37 = arith.constant dense<0.000000e+00> : vector<1x128xf32>
    %181 = tpu.matmul %176, %2, %cst_37 {dimension_numbers = #tpu.dot_dimension_numbers<[1], [0], [0], [1], [0, 0, 1, 1], [], []>} : vector<1x32xf32>, vector<32x128xf32>, vector<1x128xf32> -> vector<1x128xf32>
    %182 = arith.addf %180, %181 : vector<1x128xf32>
    %183 = vector.extract_strided_slice %182 {offsets = [0, 0], sizes = [1, 96], strides = [1, 1]} : vector<1x128xf32> to vector<1x96xf32>
    %184 = arith.negf %183 : vector<1x96xf32>
    %185 = math.exp %184 : vector<1x96xf32>
    %cst_38 = arith.constant 1.000000e+00 : f32
    %186 = vector.broadcast %cst_38 : f32 to vector<1x96xf32>
    %187 = arith.addf %186, %185 : vector<1x96xf32>
    %188 = arith.divf %186, %187 : vector<1x96xf32>
    %189 = vector.extract_strided_slice %182 {offsets = [0, 96], sizes = [1, 32], strides = [1, 1]} : vector<1x128xf32> to vector<1x32xf32>
    %190 = math.tanh %189 : vector<1x32xf32>
    %191 = vector.extract_strided_slice %188 {offsets = [0, 0], sizes = [1, 32], strides = [1, 1]} : vector<1x96xf32> to vector<1x32xf32>
    %192 = vector.extract_strided_slice %188 {offsets = [0, 32], sizes = [1, 32], strides = [1, 1]} : vector<1x96xf32> to vector<1x32xf32>
    %193 = vector.extract_strided_slice %188 {offsets = [0, 64], sizes = [1, 32], strides = [1, 1]} : vector<1x96xf32> to vector<1x32xf32>
    %194 = arith.mulf %192, %174 : vector<1x32xf32>
    %195 = arith.mulf %191, %190 : vector<1x32xf32>
    %196 = arith.addf %194, %195 : vector<1x32xf32>
    %197 = math.tanh %196 : vector<1x32xf32>
    %198 = arith.mulf %193, %197 : vector<1x32xf32>
    %199 = arith.index_cast %c8_i32 : i32 to index
    %c0_39 = arith.constant 0 : index
    %200 = vector.load %arg5[%199, %c0_39] : memref<16x32xf32, #tpu.memory_space<vmem>>, vector<1x32xf32>
    tpu.vector_store %arg5[%199, %c0_39], %198 {strides = array<i32>} : memref<16x32xf32, #tpu.memory_space<vmem>>, vector<1x32xf32>,
    %c9_i32 = arith.constant 9 : i32
    %201 = arith.index_cast %c9_i32 : i32 to index
    %c0_40 = arith.constant 0 : index
    %202 = vector.load %arg1[%201, %c0_40] : memref<16x128xf32, #tpu.memory_space<vmem>>, vector<1x128xf32>
    %cst_41 = arith.constant dense<0.000000e+00> : vector<1x128xf32>
    %203 = tpu.matmul %198, %2, %cst_41 {dimension_numbers = #tpu.dot_dimension_numbers<[1], [0], [0], [1], [0, 0, 1, 1], [], []>} : vector<1x32xf32>, vector<32x128xf32>, vector<1x128xf32> -> vector<1x128xf32>
    %204 = arith.addf %202, %203 : vector<1x128xf32>
    %205 = vector.extract_strided_slice %204 {offsets = [0, 0], sizes = [1, 96], strides = [1, 1]} : vector<1x128xf32> to vector<1x96xf32>
    %206 = arith.negf %205 : vector<1x96xf32>
    %207 = math.exp %206 : vector<1x96xf32>
    %cst_42 = arith.constant 1.000000e+00 : f32
    %208 = vector.broadcast %cst_42 : f32 to vector<1x96xf32>
    %209 = arith.addf %208, %207 : vector<1x96xf32>
    %210 = arith.divf %208, %209 : vector<1x96xf32>
    %211 = vector.extract_strided_slice %204 {offsets = [0, 96], sizes = [1, 32], strides = [1, 1]} : vector<1x128xf32> to vector<1x32xf32>
    %212 = math.tanh %211 : vector<1x32xf32>
    %213 = vector.extract_strided_slice %210 {offsets = [0, 0], sizes = [1, 32], strides = [1, 1]} : vector<1x96xf32> to vector<1x32xf32>
    %214 = vector.extract_strided_slice %210 {offsets = [0, 32], sizes = [1, 32], strides = [1, 1]} : vector<1x96xf32> to vector<1x32xf32>
    %215 = vector.extract_strided_slice %210 {offsets = [0, 64], sizes = [1, 32], strides = [1, 1]} : vector<1x96xf32> to vector<1x32xf32>
    %216 = arith.mulf %214, %196 : vector<1x32xf32>
    %217 = arith.mulf %213, %212 : vector<1x32xf32>
    %218 = arith.addf %216, %217 : vector<1x32xf32>
    %219 = math.tanh %218 : vector<1x32xf32>
    %220 = arith.mulf %215, %219 : vector<1x32xf32>
    %221 = arith.index_cast %c9_i32 : i32 to index
    %c0_43 = arith.constant 0 : index
    %222 = vector.load %arg5[%221, %c0_43] : memref<16x32xf32, #tpu.memory_space<vmem>>, vector<1x32xf32>
    tpu.vector_store %arg5[%221, %c0_43], %220 {strides = array<i32>} : memref<16x32xf32, #tpu.memory_space<vmem>>, vector<1x32xf32>,
    %c10_i32 = arith.constant 10 : i32
    %223 = arith.index_cast %c10_i32 : i32 to index
    %c0_44 = arith.constant 0 : index
    %224 = vector.load %arg1[%223, %c0_44] : memref<16x128xf32, #tpu.memory_space<vmem>>, vector<1x128xf32>
    %cst_45 = arith.constant dense<0.000000e+00> : vector<1x128xf32>
    %225 = tpu.matmul %220, %2, %cst_45 {dimension_numbers = #tpu.dot_dimension_numbers<[1], [0], [0], [1], [0, 0, 1, 1], [], []>} : vector<1x32xf32>, vector<32x128xf32>, vector<1x128xf32> -> vector<1x128xf32>
    %226 = arith.addf %224, %225 : vector<1x128xf32>
    %227 = vector.extract_strided_slice %226 {offsets = [0, 0], sizes = [1, 96], strides = [1, 1]} : vector<1x128xf32> to vector<1x96xf32>
    %228 = arith.negf %227 : vector<1x96xf32>
    %229 = math.exp %228 : vector<1x96xf32>
    %cst_46 = arith.constant 1.000000e+00 : f32
    %230 = vector.broadcast %cst_46 : f32 to vector<1x96xf32>
    %231 = arith.addf %230, %229 : vector<1x96xf32>
    %232 = arith.divf %230, %231 : vector<1x96xf32>
    %233 = vector.extract_strided_slice %226 {offsets = [0, 96], sizes = [1, 32], strides = [1, 1]} : vector<1x128xf32> to vector<1x32xf32>
    %234 = math.tanh %233 : vector<1x32xf32>
    %235 = vector.extract_strided_slice %232 {offsets = [0, 0], sizes = [1, 32], strides = [1, 1]} : vector<1x96xf32> to vector<1x32xf32>
    %236 = vector.extract_strided_slice %232 {offsets = [0, 32], sizes = [1, 32], strides = [1, 1]} : vector<1x96xf32> to vector<1x32xf32>
    %237 = vector.extract_strided_slice %232 {offsets = [0, 64], sizes = [1, 32], strides = [1, 1]} : vector<1x96xf32> to vector<1x32xf32>
    %238 = arith.mulf %236, %218 : vector<1x32xf32>
    %239 = arith.mulf %235, %234 : vector<1x32xf32>
    %240 = arith.addf %238, %239 : vector<1x32xf32>
    %241 = math.tanh %240 : vector<1x32xf32>
    %242 = arith.mulf %237, %241 : vector<1x32xf32>
    %243 = arith.index_cast %c10_i32 : i32 to index
    %c0_47 = arith.constant 0 : index
    %244 = vector.load %arg5[%243, %c0_47] : memref<16x32xf32, #tpu.memory_space<vmem>>, vector<1x32xf32>
    tpu.vector_store %arg5[%243, %c0_47], %242 {strides = array<i32>} : memref<16x32xf32, #tpu.memory_space<vmem>>, vector<1x32xf32>,
    %c11_i32 = arith.constant 11 : i32
    %245 = arith.index_cast %c11_i32 : i32 to index
    %c0_48 = arith.constant 0 : index
    %246 = vector.load %arg1[%245, %c0_48] : memref<16x128xf32, #tpu.memory_space<vmem>>, vector<1x128xf32>
    %cst_49 = arith.constant dense<0.000000e+00> : vector<1x128xf32>
    %247 = tpu.matmul %242, %2, %cst_49 {dimension_numbers = #tpu.dot_dimension_numbers<[1], [0], [0], [1], [0, 0, 1, 1], [], []>} : vector<1x32xf32>, vector<32x128xf32>, vector<1x128xf32> -> vector<1x128xf32>
    %248 = arith.addf %246, %247 : vector<1x128xf32>
    %249 = vector.extract_strided_slice %248 {offsets = [0, 0], sizes = [1, 96], strides = [1, 1]} : vector<1x128xf32> to vector<1x96xf32>
    %250 = arith.negf %249 : vector<1x96xf32>
    %251 = math.exp %250 : vector<1x96xf32>
    %cst_50 = arith.constant 1.000000e+00 : f32
    %252 = vector.broadcast %cst_50 : f32 to vector<1x96xf32>
    %253 = arith.addf %252, %251 : vector<1x96xf32>
    %254 = arith.divf %252, %253 : vector<1x96xf32>
    %255 = vector.extract_strided_slice %248 {offsets = [0, 96], sizes = [1, 32], strides = [1, 1]} : vector<1x128xf32> to vector<1x32xf32>
    %256 = math.tanh %255 : vector<1x32xf32>
    %257 = vector.extract_strided_slice %254 {offsets = [0, 0], sizes = [1, 32], strides = [1, 1]} : vector<1x96xf32> to vector<1x32xf32>
    %258 = vector.extract_strided_slice %254 {offsets = [0, 32], sizes = [1, 32], strides = [1, 1]} : vector<1x96xf32> to vector<1x32xf32>
    %259 = vector.extract_strided_slice %254 {offsets = [0, 64], sizes = [1, 32], strides = [1, 1]} : vector<1x96xf32> to vector<1x32xf32>
    %260 = arith.mulf %258, %240 : vector<1x32xf32>
    %261 = arith.mulf %257, %256 : vector<1x32xf32>
    %262 = arith.addf %260, %261 : vector<1x32xf32>
    %263 = math.tanh %262 : vector<1x32xf32>
    %264 = arith.mulf %259, %263 : vector<1x32xf32>
    %265 = arith.index_cast %c11_i32 : i32 to index
    %c0_51 = arith.constant 0 : index
    %266 = vector.load %arg5[%265, %c0_51] : memref<16x32xf32, #tpu.memory_space<vmem>>, vector<1x32xf32>
    tpu.vector_store %arg5[%265, %c0_51], %264 {strides = array<i32>} : memref<16x32xf32, #tpu.memory_space<vmem>>, vector<1x32xf32>,
    %c12_i32 = arith.constant 12 : i32
    %267 = arith.index_cast %c12_i32 : i32 to index
    %c0_52 = arith.constant 0 : index
    %268 = vector.load %arg1[%267, %c0_52] : memref<16x128xf32, #tpu.memory_space<vmem>>, vector<1x128xf32>
    %cst_53 = arith.constant dense<0.000000e+00> : vector<1x128xf32>
    %269 = tpu.matmul %264, %2, %cst_53 {dimension_numbers = #tpu.dot_dimension_numbers<[1], [0], [0], [1], [0, 0, 1, 1], [], []>} : vector<1x32xf32>, vector<32x128xf32>, vector<1x128xf32> -> vector<1x128xf32>
    %270 = arith.addf %268, %269 : vector<1x128xf32>
    %271 = vector.extract_strided_slice %270 {offsets = [0, 0], sizes = [1, 96], strides = [1, 1]} : vector<1x128xf32> to vector<1x96xf32>
    %272 = arith.negf %271 : vector<1x96xf32>
    %273 = math.exp %272 : vector<1x96xf32>
    %cst_54 = arith.constant 1.000000e+00 : f32
    %274 = vector.broadcast %cst_54 : f32 to vector<1x96xf32>
    %275 = arith.addf %274, %273 : vector<1x96xf32>
    %276 = arith.divf %274, %275 : vector<1x96xf32>
    %277 = vector.extract_strided_slice %270 {offsets = [0, 96], sizes = [1, 32], strides = [1, 1]} : vector<1x128xf32> to vector<1x32xf32>
    %278 = math.tanh %277 : vector<1x32xf32>
    %279 = vector.extract_strided_slice %276 {offsets = [0, 0], sizes = [1, 32], strides = [1, 1]} : vector<1x96xf32> to vector<1x32xf32>
    %280 = vector.extract_strided_slice %276 {offsets = [0, 32], sizes = [1, 32], strides = [1, 1]} : vector<1x96xf32> to vector<1x32xf32>
    %281 = vector.extract_strided_slice %276 {offsets = [0, 64], sizes = [1, 32], strides = [1, 1]} : vector<1x96xf32> to vector<1x32xf32>
    %282 = arith.mulf %280, %262 : vector<1x32xf32>
    %283 = arith.mulf %279, %278 : vector<1x32xf32>
    %284 = arith.addf %282, %283 : vector<1x32xf32>
    %285 = math.tanh %284 : vector<1x32xf32>
    %286 = arith.mulf %281, %285 : vector<1x32xf32>
    %287 = arith.index_cast %c12_i32 : i32 to index
    %c0_55 = arith.constant 0 : index
    %288 = vector.load %arg5[%287, %c0_55] : memref<16x32xf32, #tpu.memory_space<vmem>>, vector<1x32xf32>
    tpu.vector_store %arg5[%287, %c0_55], %286 {strides = array<i32>} : memref<16x32xf32, #tpu.memory_space<vmem>>, vector<1x32xf32>,
    %c13_i32 = arith.constant 13 : i32
    %289 = arith.index_cast %c13_i32 : i32 to index
    %c0_56 = arith.constant 0 : index
    %290 = vector.load %arg1[%289, %c0_56] : memref<16x128xf32, #tpu.memory_space<vmem>>, vector<1x128xf32>
    %cst_57 = arith.constant dense<0.000000e+00> : vector<1x128xf32>
    %291 = tpu.matmul %286, %2, %cst_57 {dimension_numbers = #tpu.dot_dimension_numbers<[1], [0], [0], [1], [0, 0, 1, 1], [], []>} : vector<1x32xf32>, vector<32x128xf32>, vector<1x128xf32> -> vector<1x128xf32>
    %292 = arith.addf %290, %291 : vector<1x128xf32>
    %293 = vector.extract_strided_slice %292 {offsets = [0, 0], sizes = [1, 96], strides = [1, 1]} : vector<1x128xf32> to vector<1x96xf32>
    %294 = arith.negf %293 : vector<1x96xf32>
    %295 = math.exp %294 : vector<1x96xf32>
    %cst_58 = arith.constant 1.000000e+00 : f32
    %296 = vector.broadcast %cst_58 : f32 to vector<1x96xf32>
    %297 = arith.addf %296, %295 : vector<1x96xf32>
    %298 = arith.divf %296, %297 : vector<1x96xf32>
    %299 = vector.extract_strided_slice %292 {offsets = [0, 96], sizes = [1, 32], strides = [1, 1]} : vector<1x128xf32> to vector<1x32xf32>
    %300 = math.tanh %299 : vector<1x32xf32>
    %301 = vector.extract_strided_slice %298 {offsets = [0, 0], sizes = [1, 32], strides = [1, 1]} : vector<1x96xf32> to vector<1x32xf32>
    %302 = vector.extract_strided_slice %298 {offsets = [0, 32], sizes = [1, 32], strides = [1, 1]} : vector<1x96xf32> to vector<1x32xf32>
    %303 = vector.extract_strided_slice %298 {offsets = [0, 64], sizes = [1, 32], strides = [1, 1]} : vector<1x96xf32> to vector<1x32xf32>
    %304 = arith.mulf %302, %284 : vector<1x32xf32>
    %305 = arith.mulf %301, %300 : vector<1x32xf32>
    %306 = arith.addf %304, %305 : vector<1x32xf32>
    %307 = math.tanh %306 : vector<1x32xf32>
    %308 = arith.mulf %303, %307 : vector<1x32xf32>
    %309 = arith.index_cast %c13_i32 : i32 to index
    %c0_59 = arith.constant 0 : index
    %310 = vector.load %arg5[%309, %c0_59] : memref<16x32xf32, #tpu.memory_space<vmem>>, vector<1x32xf32>
    tpu.vector_store %arg5[%309, %c0_59], %308 {strides = array<i32>} : memref<16x32xf32, #tpu.memory_space<vmem>>, vector<1x32xf32>,
    %c14_i32 = arith.constant 14 : i32
    %311 = arith.index_cast %c14_i32 : i32 to index
    %c0_60 = arith.constant 0 : index
    %312 = vector.load %arg1[%311, %c0_60] : memref<16x128xf32, #tpu.memory_space<vmem>>, vector<1x128xf32>
    %cst_61 = arith.constant dense<0.000000e+00> : vector<1x128xf32>
    %313 = tpu.matmul %308, %2, %cst_61 {dimension_numbers = #tpu.dot_dimension_numbers<[1], [0], [0], [1], [0, 0, 1, 1], [], []>} : vector<1x32xf32>, vector<32x128xf32>, vector<1x128xf32> -> vector<1x128xf32>
    %314 = arith.addf %312, %313 : vector<1x128xf32>
    %315 = vector.extract_strided_slice %314 {offsets = [0, 0], sizes = [1, 96], strides = [1, 1]} : vector<1x128xf32> to vector<1x96xf32>
    %316 = arith.negf %315 : vector<1x96xf32>
    %317 = math.exp %316 : vector<1x96xf32>
    %cst_62 = arith.constant 1.000000e+00 : f32
    %318 = vector.broadcast %cst_62 : f32 to vector<1x96xf32>
    %319 = arith.addf %318, %317 : vector<1x96xf32>
    %320 = arith.divf %318, %319 : vector<1x96xf32>
    %321 = vector.extract_strided_slice %314 {offsets = [0, 96], sizes = [1, 32], strides = [1, 1]} : vector<1x128xf32> to vector<1x32xf32>
    %322 = math.tanh %321 : vector<1x32xf32>
    %323 = vector.extract_strided_slice %320 {offsets = [0, 0], sizes = [1, 32], strides = [1, 1]} : vector<1x96xf32> to vector<1x32xf32>
    %324 = vector.extract_strided_slice %320 {offsets = [0, 32], sizes = [1, 32], strides = [1, 1]} : vector<1x96xf32> to vector<1x32xf32>
    %325 = vector.extract_strided_slice %320 {offsets = [0, 64], sizes = [1, 32], strides = [1, 1]} : vector<1x96xf32> to vector<1x32xf32>
    %326 = arith.mulf %324, %306 : vector<1x32xf32>
    %327 = arith.mulf %323, %322 : vector<1x32xf32>
    %328 = arith.addf %326, %327 : vector<1x32xf32>
    %329 = math.tanh %328 : vector<1x32xf32>
    %330 = arith.mulf %325, %329 : vector<1x32xf32>
    %331 = arith.index_cast %c14_i32 : i32 to index
    %c0_63 = arith.constant 0 : index
    %332 = vector.load %arg5[%331, %c0_63] : memref<16x32xf32, #tpu.memory_space<vmem>>, vector<1x32xf32>
    tpu.vector_store %arg5[%331, %c0_63], %330 {strides = array<i32>} : memref<16x32xf32, #tpu.memory_space<vmem>>, vector<1x32xf32>,
    %c15_i32 = arith.constant 15 : i32
    %333 = arith.index_cast %c15_i32 : i32 to index
    %c0_64 = arith.constant 0 : index
    %334 = vector.load %arg1[%333, %c0_64] : memref<16x128xf32, #tpu.memory_space<vmem>>, vector<1x128xf32>
    %cst_65 = arith.constant dense<0.000000e+00> : vector<1x128xf32>
    %335 = tpu.matmul %330, %2, %cst_65 {dimension_numbers = #tpu.dot_dimension_numbers<[1], [0], [0], [1], [0, 0, 1, 1], [], []>} : vector<1x32xf32>, vector<32x128xf32>, vector<1x128xf32> -> vector<1x128xf32>
    %336 = arith.addf %334, %335 : vector<1x128xf32>
    %337 = vector.extract_strided_slice %336 {offsets = [0, 0], sizes = [1, 96], strides = [1, 1]} : vector<1x128xf32> to vector<1x96xf32>
    %338 = arith.negf %337 : vector<1x96xf32>
    %339 = math.exp %338 : vector<1x96xf32>
    %cst_66 = arith.constant 1.000000e+00 : f32
    %340 = vector.broadcast %cst_66 : f32 to vector<1x96xf32>
    %341 = arith.addf %340, %339 : vector<1x96xf32>
    %342 = arith.divf %340, %341 : vector<1x96xf32>
    %343 = vector.extract_strided_slice %336 {offsets = [0, 96], sizes = [1, 32], strides = [1, 1]} : vector<1x128xf32> to vector<1x32xf32>
    %344 = math.tanh %343 : vector<1x32xf32>
    %345 = vector.extract_strided_slice %342 {offsets = [0, 0], sizes = [1, 32], strides = [1, 1]} : vector<1x96xf32> to vector<1x32xf32>
    %346 = vector.extract_strided_slice %342 {offsets = [0, 32], sizes = [1, 32], strides = [1, 1]} : vector<1x96xf32> to vector<1x32xf32>
    %347 = vector.extract_strided_slice %342 {offsets = [0, 64], sizes = [1, 32], strides = [1, 1]} : vector<1x96xf32> to vector<1x32xf32>
    %348 = arith.mulf %346, %328 : vector<1x32xf32>
    %349 = arith.mulf %345, %344 : vector<1x32xf32>
    %350 = arith.addf %348, %349 : vector<1x32xf32>
    %351 = math.tanh %350 : vector<1x32xf32>
    %352 = arith.mulf %347, %351 : vector<1x32xf32>
    %353 = arith.index_cast %c15_i32 : i32 to index
    %c0_67 = arith.constant 0 : index
    %354 = vector.load %arg5[%353, %c0_67] : memref<16x32xf32, #tpu.memory_space<vmem>>, vector<1x32xf32>
    tpu.vector_store %arg5[%353, %c0_67], %352 {strides = array<i32>} : memref<16x32xf32, #tpu.memory_space<vmem>>, vector<1x32xf32>,
    %c16_i32 = arith.constant 16 : i32
    %c0_68 = arith.constant 0 : index
    %c0_69 = arith.constant 0 : index
    %355 = vector.load %arg6[%c0_68, %c0_69] : memref<1x32xf32, #tpu.memory_space<vmem>>, vector<1x32xf32>
    tpu.vector_store %arg6[%c0_68, %c0_69], %352 {strides = array<i32>} : memref<1x32xf32, #tpu.memory_space<vmem>>, vector<1x32xf32>,
    %c0_70 = arith.constant 0 : index
    %c0_71 = arith.constant 0 : index
    %356 = vector.load %arg7[%c0_70, %c0_71] : memref<1x32xf32, #tpu.memory_space<vmem>>, vector<1x32xf32>
    tpu.vector_store %arg7[%c0_70, %c0_71], %350 {strides = array<i32>} : memref<1x32xf32, #tpu.memory_space<vmem>>, vector<1x32xf32>,
    return
  }
  func.func @transform_0(%arg0: i32) -> (i32, i32) {
    %c0_i32 = arith.constant 0 : i32
    %c0_i32_0 = arith.constant 0 : i32
    return %arg0, %c0_i32 : i32, i32
  }
  func.func @transform_1(%arg0: i32) -> (i32, i32) {
    %c0_i32 = arith.constant 0 : i32
    %c0_i32_0 = arith.constant 0 : i32
    %c0_i32_1 = arith.constant 0 : i32
    return %c0_i32, %c0_i32_0 : i32, i32
  }
  func.func @transform_2(%arg0: i32) -> (i32, i32) {
    %c0_i32 = arith.constant 0 : i32
    %c0_i32_0 = arith.constant 0 : i32
    %c0_i32_1 = arith.constant 0 : i32
    return %c0_i32, %c0_i32_0 : i32, i32
  }
  func.func @transform_3(%arg0: i32) -> (i32, i32) {
    %c0_i32 = arith.constant 0 : i32
    %c0_i32_0 = arith.constant 0 : i32
    %c0_i32_1 = arith.constant 0 : i32
    return %c0_i32, %c0_i32_0 : i32, i32
  }
  func.func @transform_4(%arg0: i32) -> (i32, i32) {
    %c0_i32 = arith.constant 0 : i32
    %c0_i32_0 = arith.constant 0 : i32
    return %arg0, %c0_i32 : i32, i32
  }
  func.func @transform_5(%arg0: i32) -> (i32, i32) {
    %c0_i32 = arith.constant 0 : i32
    %c0_i32_0 = arith.constant 0 : i32
    %c0_i32_1 = arith.constant 0 : i32
    return %c0_i32, %c0_i32_0 : i32, i32
  }
  func.func @transform_6(%arg0: i32) -> (i32, i32) {
    %c0_i32 = arith.constant 0 : i32
    %c0_i32_0 = arith.constant 0 : i32
    %c0_i32_1 = arith.constant 0 : i32
    return %c0_i32, %c0_i32_0 : i32, i32
  }
}

</mosaic_0001>

<bundles_post_ra>
// kernel: lstm_forward.1
= control target key start
LH: loop header
LB: loop body
LE: loop exit
PB: predicated region body
PF: predicated region fallthrough
CT: control target
= control target key end

     0   :  { %12 = vsyncpa [#allocation5], 0  ;;  %s1681_s0 = inlined_call_operand.vmem [shape: f32[16,128], index: 0, kind: input, shape index: {}]   ;;  %s1682_s1 = inlined_call_operand.vmem [shape: f32[32,128], index: 1, kind: input, shape index: {}]   ;;  %s1683_s2 = inlined_call_operand.vmem [shape: f32[1,32], index: 2, kind: input, shape index: {}]   ;;  %s1684_s3 = inlined_call_operand.vmem [shape: f32[1,32], index: 3, kind: input, shape index: {}]   ;;  %s1685_s4 = inlined_call_operand.hbm [shape: f32[16,32], index: 4, kind: output, shape index: {0}]   ;;  %s1686_s5 = inlined_call_operand.hbm [shape: f32[1,32], index: 5, kind: output, shape index: {1}]   ;;  %s1687_s6 = inlined_call_operand.hbm [shape: f32[1,32], index: 6, kind: output, shape index: {2}]  }
   0x1   :  { %v1438_v0 = vld [vmem:[%s1682_s1 + $0x18] sm:$0xff]  ;;  %v1443_v1 = vld [vmem:[%s1682_s1 + $0x10] sm:$0xff]  ;;  %v1450_v2 = vld [vmem:[%s1682_s1 + $0x8] sm:$0xff] }
   0x2   :  { %45 = vmatpush.msra.mxu0 %v1438_v0  ;;  %117 = vmatpush.msra.mxu1 %v1438_v0 }
   0x3   :  { %183 = vmatpush.msra.mxu2 %v1438_v0  ;;  %249 = vmatpush.msra.mxu3 %v1438_v0 }
   0x4   :  { %13 = vsyncpa [#allocation7], 0  ;;  %46 = vmatpush.msra.mxu0 %v1443_v1  ;;  %118 = vmatpush.msra.mxu1 %v1443_v1  ;;  %v1459_v3 = vld [vmem:[%s1682_s1] sm:$0xff]  ;;  %vm29_vm0 = vcmask 261120   ;;  %s1392_s7 = smov 32   ;;  %vm100_vm5 = vcmask 253952  }
   0x5   :  { %184 = vmatpush.msra.mxu2 %v1443_v1  ;;  %250 = vmatpush.msra.mxu3 %v1443_v1  ;;  %v22_v4 = vld [vmem:[%s1683_s2] sm:$0x1]  ;;  %v102_v33 = vld [vmem:[%s1681_s0 + $0x1] sm:$0x1]  ;;  %v168_v59 = vld [vmem:[%s1681_s0 + $0x2] sm:$0x1] }
   0x6   :  { %47 = vmatpush.msra.mxu0 %v1450_v2  ;;  %119 = vmatpush.msra.mxu1 %v1450_v2  ;;  %v28_v5 = vld [vmem:[%s1681_s0] sm:$0x1]  ;;  %s1395_s15 = smov [#allocation4]   ;;  %s1104_s19 = sshll.u32 %s1685_s4, 4  ;;  %s1105_s19 = int_to_ptr.hbm [resolvable:$true] %s1104_s19 }
   0x7   :  { %185 = vmatpush.msra.mxu2 %v1450_v2  ;;  %251 = vmatpush.msra.mxu3 %v1450_v2  ;;  %v1187_v9 = vld [vmem:[%s1684_s3] ss:$0 sm:$0xff]  ;;  %s1393_s3 = smov 64   ;;  %s1102_s16 = sshll.u32 %s1395_s15, 4  ;;  %s1103_s16 = int_to_ptr.vmem [resolvable:$true] %s1102_s16 }
   0x8   :  { %48 = vmatpush.msra.mxu0 %v1459_v3  ;;  %120 = vmatpush.msra.mxu1 %v1459_v3  ;;  %s1396_s20 = smov [#allocation6]   ;;  %s1118_s24 = sshll.u32 %s1686_s5, 4  ;;  %s1119_s24 = int_to_ptr.hbm [resolvable:$true] %s1118_s24 }
   0x9   :  { %1147 = vmatmul.msk.f32.vlgmr.msra.gmra.mxu0 %vm29_vm0, %v22_v4  ;;  %186 = vmatpush.msra.mxu2 %v1459_v3  ;;  %s1116_s21 = sshll.u32 %s1396_s20, 4  ;;  %s1398_s4 = smov 128   ;;  %s1117_s21 = int_to_ptr.vmem [resolvable:$true] %s1116_s21 }
   0xa   :  { %252 = vmatpush.msra.mxu3 %v1459_v3  ;;  %315 = vmatpush.msrb.mxu0 %v1438_v0  ;;  %s1399_s28 = smov 8  }
   0xb   :  { %381 = vmatpush.msrb.mxu1 %v1438_v0  ;;  %447 = vmatpush.msrb.mxu2 %v1438_v0 }
   0xc   :  { %316 = vmatpush.msrb.mxu0 %v1443_v1  ;;  %513 = vmatpush.msrb.mxu3 %v1438_v0 }
   0xd   :  { %382 = vmatpush.msrb.mxu1 %v1443_v1  ;;  %448 = vmatpush.msrb.mxu2 %v1443_v1 }
   0xe   :  { %317 = vmatpush.msrb.mxu0 %v1450_v2  ;;  %514 = vmatpush.msrb.mxu3 %v1443_v1 }
   0xf   :  { %383 = vmatpush.msrb.mxu1 %v1450_v2  ;;  %449 = vmatpush.msrb.mxu2 %v1450_v2 }
  0x10   :  { %318 = vmatpush.msrb.mxu0 %v1459_v3  ;;  %515 = vmatpush.msrb.mxu3 %v1450_v2 }
  0x11   :  { %384 = vmatpush.msrb.mxu1 %v1459_v3  ;;  %450 = vmatpush.msrb.mxu2 %v1459_v3 }
  0x12   :  { %516 = vmatpush.msrb.mxu3 %v1459_v3  ;;  %579 = vmatpush.msra.mxu0 %v1438_v0 }
  0x14   :  { %580 = vmatpush.msra.mxu0 %v1443_v1 }
  0x16   :  { %581 = vmatpush.msra.mxu0 %v1450_v2 }
  0x18   :  { %582 = vmatpush.msra.mxu0 %v1459_v3 }
  0x86   :  { %v50_v6 = vpop.f32.mrf.mxu0 }
  0x87   :  { %v53_v7 = vadd.f32 %v50_v6, %v28_v5 }
  0x89   :  { %1188 = vtanh.f32 %v53_v7  ;;  %v1148_v10 = vmul.f32 -1.442695, %v53_v7 }
  0x8b   :  { %1190 = vpow2.f32 %v1148_v10 }
  0x8f   :  { %v1189_v8 = vpop.eup %1188 }
  0x90   :  { %81 = vrot.lane.b32.xlu0 %v1189_v8, %s1392_s7 }
  0x91   :  { %v1191_v11 = vpop.eup %1190 }
  0x92   :  { %v57_v12 = vadd.f32 1.0, %v1191_v11 }
  0x94   :  { %1192 = vrcp.f32 %v57_v12  ;;  %v69_v18 = vand.u32 2147483648, %v57_v12  ;;  %vm63_vm2 = vweird.f32 %v57_v12  ;;  %v67_v19 = vand.u32 2147483647, %v57_v12 }
  0x96   :  { %v70_v21 = vor.u32 1.1754944e-38, %v69_v18  ;;  %vm68_vm4 = vcmp.eq.f32.partialorder %v67_v19, 8.507059e+37 }
  0x98   :  { %76 = vrot.lane.b32.xlu0 %v1187_v9, %s1392_s7 }
  0x9a   :  { %v1193_v13 = vpop.eup %1192 }
  0x9b   :  { %v59_v14 = vmul.f32 %v1193_v13, %v57_v12  ;;  %vm64_vm1 = vweird.f32 %v1193_v13 }
  0x9c   :  { %vm65_vm3 = vmor %vm63_vm2, %vm64_vm1 }
  0x9d   :  { %v60_v15 = vsub.f32 1.0, %v59_v14 }
  0x9f   :  { %v61_v16 = vmul.f32 %v1193_v13, %v60_v15 }
  0xa1   :  { %v62_v17 = vadd.f32 %v1193_v13, %v61_v16 }
  0xa3   :  { %v66_v20 = vsel %vm65_vm3, %v1193_v13, %v62_v17 }
  0xa4   :  { %v71_v23 = vsel %vm68_vm4, %v70_v21, %v66_v20 }
 0x102   :  { %v82_v22 = vpop.permute.xlu0 %81 }
 0x103   :  { %v84_v24 = vmul.f32 %v82_v22, %v71_v23 }
 0x105   :  { %86 = vrot.lane.b32.xlu1 %v84_v24, %s1392_s7 }
 0x10a   :  { %v77_v25 = vpop.permute.xlu0 %76 }
 0x10b   :  { %v79_v26 = vmul.f32 %v77_v25, %v71_v23  ;;  %v234_v25 = vld [vmem:[%s1681_s0 + $0x3] sm:$0x1] }
 0x177   :  { %v87_v27 = vpop.permute.xlu1 %86 }
 0x178   :  { %v89_v28 = vadd.f32 %v87_v27, %v79_v26 }
 0x17a   :  { %1194 = vtanh.f32 %v89_v28 }
 0x180   :  { %v1195_v29 = vpop.eup %1194 }
 0x181   :  { %92 = vrot.lane.b32.xlu1 %v1195_v29, %s1392_s7 }
 0x1f3   :  { %v93_v30 = vpop.permute.xlu1 %92 }
 0x1f4   :  { %v95_v31 = vmul.f32 %v93_v30, %v71_v23 }
 0x1f6   :  { %97 = vrot.lane.b32.xlu2 %v95_v31, %s1393_s3 }
 0x250   :  { %v98_v32 = vpop.permute.xlu2 %97 }
 0x251   :  { %101 = vst.msk [vmem:[#allocation4] sm:$0x1] %vm100_vm5, %v98_v32  ;;  %1149 = vmatmul.msk.f32.vlgmr.msra.gmra.mxu1 %vm29_vm0, %v98_v32 }
 0x252   :  { %645 = vmatpush.msra.mxu1 %v1438_v0 }
 0x254   :  { %646 = vmatpush.msra.mxu1 %v1443_v1 }
 0x256   :  { %647 = vmatpush.msra.mxu1 %v1450_v2 }
 0x258   :  { %648 = vmatpush.msra.mxu1 %v1459_v3 }
 0x2ce   :  { %v122_v34 = vpop.f32.mrf.mxu1 }
 0x2cf   :  { %v125_v35 = vadd.f32 %v122_v34, %v102_v33 }
 0x2d1   :  { %1196 = vtanh.f32 %v125_v35  ;;  %v1150_v37 = vmul.f32 -1.442695, %v125_v35 }
 0x2d3   :  { %1198 = vpow2.f32 %v1150_v37 }
 0x2d7   :  { %v1197_v36 = vpop.eup %1196 }
 0x2d8   :  { %148 = vrot.lane.b32.xlu2 %v1197_v36, %s1392_s7 }
 0x2d9   :  { %v1199_v38 = vpop.eup %1198 }
 0x2da   :  { %v129_v39 = vadd.f32 1.0, %v1199_v38 }
 0x2dc   :  { %1200 = vrcp.f32 %v129_v39  ;;  %v141_v45 = vand.u32 2147483648, %v129_v39  ;;  %vm135_vm7 = vweird.f32 %v129_v39  ;;  %v139_v46 = vand.u32 2147483647, %v129_v39 }
 0x2de   :  { %v142_v48 = vor.u32 1.1754944e-38, %v141_v45  ;;  %vm140_vm9 = vcmp.eq.f32.partialorder %v139_v46, 8.507059e+37 }
 0x2e2   :  { %v1201_v40 = vpop.eup %1200 }
 0x2e3   :  { %v131_v41 = vmul.f32 %v1201_v40, %v129_v39  ;;  %vm136_vm6 = vweird.f32 %v1201_v40 }
 0x2e4   :  { %vm137_vm8 = vmor %vm135_vm7, %vm136_vm6 }
 0x2e5   :  { %v132_v42 = vsub.f32 1.0, %v131_v41 }
 0x2e7   :  { %v133_v43 = vmul.f32 %v1201_v40, %v132_v42 }
 0x2e9   :  { %v134_v44 = vadd.f32 %v1201_v40, %v133_v43 }
 0x2eb   :  { %v138_v47 = vsel %vm137_vm8, %v1201_v40, %v134_v44 }
 0x2ec   :  { %v143_v50 = vsel %vm140_vm9, %v142_v48, %v138_v47 }
 0x2ed   :  { %v146_v52 = vmul.f32 %v143_v50, %v89_v28 }
 0x332   :  { %v149_v49 = vpop.permute.xlu2 %148 }
 0x333   :  { %v151_v51 = vmul.f32 %v149_v49, %v143_v50 }
 0x335   :  { %153 = vrot.lane.b32.xlu0 %v151_v51, %s1392_s7  ;;  %v300_v51 = vld [vmem:[%s1681_s0 + $0x4] sm:$0x1] }
 0x3a7   :  { %v154_v53 = vpop.permute.xlu0 %153 }
 0x3a8   :  { %v156_v54 = vadd.f32 %v154_v53, %v146_v52 }
 0x3aa   :  { %1202 = vtanh.f32 %v156_v54 }
 0x3b0   :  { %v1203_v55 = vpop.eup %1202 }
 0x3b1   :  { %159 = vrot.lane.b32.xlu1 %v1203_v55, %s1392_s7 }
 0x423   :  { %v160_v56 = vpop.permute.xlu1 %159 }
 0x424   :  { %v162_v57 = vmul.f32 %v160_v56, %v143_v50 }
 0x426   :  { %164 = vrot.lane.b32.xlu2 %v162_v57, %s1393_s3 }
 0x480   :  { %v165_v58 = vpop.permute.xlu2 %164 }
 0x481   :  { %167 = vst.msk [vmem:[#allocation4 + $0x1] sm:$0x1] %vm100_vm5, %v165_v58  ;;  %1151 = vmatmul.msk.f32.vlgmr.msra.gmra.mxu2 %vm29_vm0, %v165_v58 }
 0x482   :  { %711 = vmatpush.msra.mxu2 %v1438_v0 }
 0x484   :  { %712 = vmatpush.msra.mxu2 %v1443_v1 }
 0x486   :  { %713 = vmatpush.msra.mxu2 %v1450_v2 }
 0x488   :  { %714 = vmatpush.msra.mxu2 %v1459_v3 }
 0x504   :  { %v188_v60 = vpop.f32.mrf.mxu2 }
 0x505   :  { %v191_v61 = vadd.f32 %v188_v60, %v168_v59 }
 0x507   :  { %1204 = vtanh.f32 %v191_v61  ;;  %v1152_v63 = vmul.f32 -1.442695, %v191_v61 }
 0x509   :  { %1206 = vpow2.f32 %v1152_v63 }
 0x50d   :  { %v1205_v62 = vpop.eup %1204 }
 0x50e   :  { %214 = vrot.lane.b32.xlu0 %v1205_v62, %s1392_s7 }
 0x50f   :  { %v1207_v4 = vpop.eup %1206 }
 0x510   :  { %v195_v5 = vadd.f32 1.0, %v1207_v4 }
 0x512   :  { %1208 = vrcp.f32 %v195_v5  ;;  %v207_v11 = vand.u32 2147483648, %v195_v5  ;;  %vm201_vm11 = vweird.f32 %v195_v5  ;;  %v205_v12 = vand.u32 2147483647, %v195_v5 }
 0x514   :  { %v208_v14 = vor.u32 1.1754944e-38, %v207_v11  ;;  %vm206_vm13 = vcmp.eq.f32.partialorder %v205_v12, 8.507059e+37 }
 0x518   :  { %v1209_v6 = vpop.eup %1208 }
 0x519   :  { %v197_v7 = vmul.f32 %v1209_v6, %v195_v5  ;;  %vm202_vm10 = vweird.f32 %v1209_v6 }
 0x51a   :  { %vm203_vm12 = vmor %vm201_vm11, %vm202_vm10 }
 0x51b   :  { %v198_v8 = vsub.f32 1.0, %v197_v7 }
 0x51d   :  { %v199_v9 = vmul.f32 %v1209_v6, %v198_v8 }
 0x51f   :  { %v200_v10 = vadd.f32 %v1209_v6, %v199_v9 }
 0x521   :  { %v204_v13 = vsel %vm203_vm12, %v1209_v6, %v200_v10 }
 0x522   :  { %v209_v16 = vsel %vm206_vm13, %v208_v14, %v204_v13 }
 0x523   :  { %v212_v18 = vmul.f32 %v209_v16, %v156_v54 }
 0x580   :  { %v215_v15 = vpop.permute.xlu0 %214 }
 0x581   :  { %v217_v17 = vmul.f32 %v215_v15, %v209_v16 }
 0x583   :  { %219 = vrot.lane.b32.xlu1 %v217_v17, %s1392_s7  ;;  %v366_v17 = vld [vmem:[%s1681_s0 + $0x5] sm:$0x1] }
 0x5f5   :  { %v220_v19 = vpop.permute.xlu1 %219 }
 0x5f6   :  { %v222_v20 = vadd.f32 %v220_v19, %v212_v18 }
 0x5f8   :  { %1210 = vtanh.f32 %v222_v20 }
 0x5fe   :  { %v1211_v21 = vpop.eup %1210 }
 0x5ff   :  { %225 = vrot.lane.b32.xlu2 %v1211_v21, %s1392_s7 }
 0x659   :  { %v226_v22 = vpop.permute.xlu2 %225 }
 0x65a   :  { %v228_v23 = vmul.f32 %v226_v22, %v209_v16 }
 0x65c   :  { %230 = vrot.lane.b32.xlu0 %v228_v23, %s1393_s3 }
 0x6ce   :  { %v231_v24 = vpop.permute.xlu0 %230 }
 0x6cf   :  { %233 = vst.msk [vmem:[#allocation4 + $0x2] sm:$0x1] %vm100_vm5, %v231_v24  ;;  %1153 = vmatmul.msk.f32.vlgmr.msra.gmra.mxu3 %vm29_vm0, %v231_v24 }
 0x6d0   :  { %777 = vmatpush.msra.mxu3 %v1438_v0 }
 0x6d2   :  { %778 = vmatpush.msra.mxu3 %v1443_v1 }
 0x6d4   :  { %779 = vmatpush.msra.mxu3 %v1450_v2 }
 0x6d6   :  { %780 = vmatpush.msra.mxu3 %v1459_v3 }
 0x752   :  { %v254_v26 = vpop.f32.mrf.mxu3 }
 0x753   :  { %v257_v27 = vadd.f32 %v254_v26, %v234_v25 }
 0x755   :  { %1212 = vtanh.f32 %v257_v27  ;;  %v1154_v29 = vmul.f32 -1.442695, %v257_v27 }
 0x757   :  { %1214 = vpow2.f32 %v1154_v29 }
 0x75b   :  { %v1213_v28 = vpop.eup %1212 }
 0x75c   :  { %280 = vrot.lane.b32.xlu1 %v1213_v28, %s1392_s7 }
 0x75d   :  { %v1215_v30 = vpop.eup %1214 }
 0x75e   :  { %v261_v31 = vadd.f32 1.0, %v1215_v30 }
 0x760   :  { %1216 = vrcp.f32 %v261_v31  ;;  %v273_v37 = vand.u32 2147483648, %v261_v31  ;;  %vm267_vm15 = vweird.f32 %v261_v31  ;;  %v271_v38 = vand.u32 2147483647, %v261_v31 }
 0x762   :  { %v274_v40 = vor.u32 1.1754944e-38, %v273_v37  ;;  %vm272_vm2 = vcmp.eq.f32.partialorder %v271_v38, 8.507059e+37 }
 0x766   :  { %v1217_v32 = vpop.eup %1216 }
 0x767   :  { %v263_v33 = vmul.f32 %v1217_v32, %v261_v31  ;;  %vm268_vm14 = vweird.f32 %v1217_v32 }
 0x768   :  { %vm269_vm1 = vmor %vm267_vm15, %vm268_vm14 }
 0x769   :  { %v264_v34 = vsub.f32 1.0, %v263_v33 }
 0x76b   :  { %v265_v35 = vmul.f32 %v1217_v32, %v264_v34 }
 0x76d   :  { %v266_v36 = vadd.f32 %v1217_v32, %v265_v35 }
 0x76f   :  { %v270_v39 = vsel %vm269_vm1, %v1217_v32, %v266_v36 }
 0x770   :  { %v275_v42 = vsel %vm272_vm2, %v274_v40, %v270_v39 }
 0x771   :  { %v278_v44 = vmul.f32 %v275_v42, %v222_v20 }
 0x7ce   :  { %v281_v41 = vpop.permute.xlu1 %280 }
 0x7cf   :  { %v283_v43 = vmul.f32 %v281_v41, %v275_v42 }
 0x7d1   :  { %285 = vrot.lane.b32.xlu2 %v283_v43, %s1392_s7  ;;  %v432_v43 = vld [vmem:[%s1681_s0 + $0x6] sm:$0x1] }
 0x82b   :  { %v286_v45 = vpop.permute.xlu2 %285 }
 0x82c   :  { %v288_v46 = vadd.f32 %v286_v45, %v278_v44 }
 0x82e   :  { %1218 = vtanh.f32 %v288_v46 }
 0x834   :  { %v1219_v47 = vpop.eup %1218 }
 0x835   :  { %291 = vrot.lane.b32.xlu0 %v1219_v47, %s1392_s7 }
 0x8a7   :  { %v292_v48 = vpop.permute.xlu0 %291 }
 0x8a8   :  { %v294_v49 = vmul.f32 %v292_v48, %v275_v42 }
 0x8aa   :  { %296 = vrot.lane.b32.xlu1 %v294_v49, %s1393_s3 }
 0x91c   :  { %v297_v50 = vpop.permute.xlu1 %296 }
 0x91d   :  { %299 = vst.msk [vmem:[#allocation4 + $0x3] sm:$0x1] %vm100_vm5, %v297_v50  ;;  %1155 = vmatmul.msk.f32.vlgmr.msrb.gmra.mxu0 %vm29_vm0, %v297_v50 }
 0x91e   :  { %843 = vmatpush.msrb.mxu0 %v1438_v0 }
 0x920   :  { %844 = vmatpush.msrb.mxu0 %v1443_v1 }
 0x922   :  { %845 = vmatpush.msrb.mxu0 %v1450_v2 }
 0x924   :  { %846 = vmatpush.msrb.mxu0 %v1459_v3 }
 0x99a   :  { %v320_v52 = vpop.f32.mrf.mxu0 }
 0x99b   :  { %v323_v53 = vadd.f32 %v320_v52, %v300_v51 }
 0x99d   :  { %1220 = vtanh.f32 %v323_v53  ;;  %v1156_v55 = vmul.f32 -1.442695, %v323_v53 }
 0x99f   :  { %1222 = vpow2.f32 %v1156_v55 }
 0x9a3   :  { %v1221_v54 = vpop.eup %1220 }
 0x9a4   :  { %346 = vrot.lane.b32.xlu2 %v1221_v54, %s1392_s7 }
 0x9a5   :  { %v1223_v56 = vpop.eup %1222 }
 0x9a6   :  { %v327_v57 = vadd.f32 1.0, %v1223_v56 }
 0x9a8   :  { %1224 = vrcp.f32 %v327_v57  ;;  %v339_v63 = vand.u32 2147483648, %v327_v57  ;;  %vm333_vm4 = vweird.f32 %v327_v57  ;;  %v337_v4 = vand.u32 2147483647, %v327_v57 }
 0x9aa   :  { %v340_v6 = vor.u32 1.1754944e-38, %v339_v63  ;;  %vm338_vm7 = vcmp.eq.f32.partialorder %v337_v4, 8.507059e+37 }
 0x9ae   :  { %v1225_v58 = vpop.eup %1224 }
 0x9af   :  { %v329_v59 = vmul.f32 %v1225_v58, %v327_v57  ;;  %vm334_vm3 = vweird.f32 %v1225_v58 }
 0x9b0   :  { %vm335_vm6 = vmor %vm333_vm4, %vm334_vm3 }
 0x9b1   :  { %v330_v60 = vsub.f32 1.0, %v329_v59 }
 0x9b3   :  { %v331_v61 = vmul.f32 %v1225_v58, %v330_v60 }
 0x9b5   :  { %v332_v62 = vadd.f32 %v1225_v58, %v331_v61 }
 0x9b7   :  { %v336_v5 = vsel %vm335_vm6, %v1225_v58, %v332_v62 }
 0x9b8   :  { %v341_v8 = vsel %vm338_vm7, %v340_v6, %v336_v5 }
 0x9b9   :  { %v344_v10 = vmul.f32 %v341_v8, %v288_v46 }
 0x9fe   :  { %v347_v7 = vpop.permute.xlu2 %346 }
 0x9ff   :  { %v349_v9 = vmul.f32 %v347_v7, %v341_v8 }
 0xa01   :  { %351 = vrot.lane.b32.xlu0 %v349_v9, %s1392_s7  ;;  %v498_v9 = vld [vmem:[%s1681_s0 + $0x7] sm:$0x1] }
 0xa73   :  { %v352_v11 = vpop.permute.xlu0 %351 }
 0xa74   :  { %v354_v12 = vadd.f32 %v352_v11, %v344_v10 }
 0xa76   :  { %1226 = vtanh.f32 %v354_v12 }
 0xa7c   :  { %v1227_v13 = vpop.eup %1226 }
 0xa7d   :  { %357 = vrot.lane.b32.xlu1 %v1227_v13, %s1392_s7 }
 0xaef   :  { %v358_v14 = vpop.permute.xlu1 %357 }
 0xaf0   :  { %v360_v15 = vmul.f32 %v358_v14, %v341_v8 }
 0xaf2   :  { %362 = vrot.lane.b32.xlu2 %v360_v15, %s1393_s3 }
 0xb4c   :  { %v363_v16 = vpop.permute.xlu2 %362 }
 0xb4d   :  { %365 = vst.msk [vmem:[#allocation4 + $0x4] sm:$0x1] %vm100_vm5, %v363_v16  ;;  %1157 = vmatmul.msk.f32.vlgmr.msrb.gmra.mxu1 %vm29_vm0, %v363_v16 }
 0xb4e   :  { %909 = vmatpush.msrb.mxu1 %v1438_v0 }
 0xb50   :  { %910 = vmatpush.msrb.mxu1 %v1443_v1 }
 0xb52   :  { %911 = vmatpush.msrb.mxu1 %v1450_v2 }
 0xb54   :  { %912 = vmatpush.msrb.mxu1 %v1459_v3 }
 0xbca   :  { %v386_v18 = vpop.f32.mrf.mxu1 }
 0xbcb   :  { %v389_v19 = vadd.f32 %v386_v18, %v366_v17 }
 0xbcd   :  { %1228 = vtanh.f32 %v389_v19  ;;  %v1158_v21 = vmul.f32 -1.442695, %v389_v19 }
 0xbcf   :  { %1230 = vpow2.f32 %v1158_v21 }
 0xbd3   :  { %v1229_v20 = vpop.eup %1228 }
 0xbd4   :  { %412 = vrot.lane.b32.xlu0 %v1229_v20, %s1392_s7 }
 0xbd5   :  { %v1231_v22 = vpop.eup %1230 }
 0xbd6   :  { %v393_v23 = vadd.f32 1.0, %v1231_v22 }
 0xbd8   :  { %1232 = vrcp.f32 %v393_v23  ;;  %v405_v29 = vand.u32 2147483648, %v393_v23  ;;  %vm399_vm9 = vweird.f32 %v393_v23  ;;  %v403_v30 = vand.u32 2147483647, %v393_v23 }
 0xbda   :  { %v406_v32 = vor.u32 1.1754944e-38, %v405_v29  ;;  %vm404_vm11 = vcmp.eq.f32.partialorder %v403_v30, 8.507059e+37 }
 0xbde   :  { %v1233_v24 = vpop.eup %1232 }
 0xbdf   :  { %v395_v25 = vmul.f32 %v1233_v24, %v393_v23  ;;  %vm400_vm8 = vweird.f32 %v1233_v24 }
 0xbe0   :  { %vm401_vm10 = vmor %vm399_vm9, %vm400_vm8 }
 0xbe1   :  { %v396_v26 = vsub.f32 1.0, %v395_v25 }
 0xbe3   :  { %v397_v27 = vmul.f32 %v1233_v24, %v396_v26 }
 0xbe5   :  { %v398_v28 = vadd.f32 %v1233_v24, %v397_v27 }
 0xbe7   :  { %v402_v31 = vsel %vm401_vm10, %v1233_v24, %v398_v28 }
 0xbe8   :  { %v407_v34 = vsel %vm404_vm11, %v406_v32, %v402_v31  ;;  %v564_v31 = vld [vmem:[%s1681_s0 + $0x8] sm:$0x1] }
 0xbe9   :  { %v410_v36 = vmul.f32 %v407_v34, %v354_v12 }
 0xc46   :  { %v413_v33 = vpop.permute.xlu0 %412 }
 0xc47   :  { %v415_v35 = vmul.f32 %v413_v33, %v407_v34 }
 0xc49   :  { %417 = vrot.lane.b32.xlu1 %v415_v35, %s1392_s7 }
 0xcbb   :  { %v418_v37 = vpop.permute.xlu1 %417 }
 0xcbc   :  { %v420_v38 = vadd.f32 %v418_v37, %v410_v36 }
 0xcbe   :  { %1234 = vtanh.f32 %v420_v38 }
 0xcc4   :  { %v1235_v39 = vpop.eup %1234 }
 0xcc5   :  { %423 = vrot.lane.b32.xlu2 %v1235_v39, %s1392_s7 }
 0xd1f   :  { %v424_v40 = vpop.permute.xlu2 %423 }
 0xd20   :  { %v426_v41 = vmul.f32 %v424_v40, %v407_v34 }
 0xd22   :  { %428 = vrot.lane.b32.xlu0 %v426_v41, %s1393_s3 }
 0xd94   :  { %v429_v42 = vpop.permute.xlu0 %428 }
 0xd95   :  { %431 = vst.msk [vmem:[#allocation4 + $0x5] sm:$0x1] %vm100_vm5, %v429_v42  ;;  %1159 = vmatmul.msk.f32.vlgmr.msrb.gmra.mxu2 %vm29_vm0, %v429_v42 }
 0xd96   :  { %975 = vmatpush.msrb.mxu2 %v1438_v0 }
 0xd98   :  { %976 = vmatpush.msrb.mxu2 %v1443_v1 }
 0xd9a   :  { %977 = vmatpush.msrb.mxu2 %v1450_v2 }
 0xd9c   :  { %978 = vmatpush.msrb.mxu2 %v1459_v3 }
 0xe18   :  { %v452_v44 = vpop.f32.mrf.mxu2 }
 0xe19   :  { %v455_v45 = vadd.f32 %v452_v44, %v432_v43 }
 0xe1b   :  { %1236 = vtanh.f32 %v455_v45  ;;  %v1160_v47 = vmul.f32 -1.442695, %v455_v45 }
 0xe1d   :  { %1238 = vpow2.f32 %v1160_v47 }
 0xe21   :  { %v1237_v46 = vpop.eup %1236 }
 0xe22   :  { %478 = vrot.lane.b32.xlu1 %v1237_v46, %s1392_s7 }
 0xe23   :  { %v1239_v48 = vpop.eup %1238 }
 0xe24   :  { %v459_v49 = vadd.f32 1.0, %v1239_v48 }
 0xe26   :  { %1240 = vrcp.f32 %v459_v49  ;;  %v471_v55 = vand.u32 2147483648, %v459_v49  ;;  %vm465_vm13 = vweird.f32 %v459_v49  ;;  %v469_v56 = vand.u32 2147483647, %v459_v49 }
 0xe28   :  { %v472_v58 = vor.u32 1.1754944e-38, %v471_v55  ;;  %vm470_vm15 = vcmp.eq.f32.partialorder %v469_v56, 8.507059e+37 }
 0xe2c   :  { %v1241_v50 = vpop.eup %1240 }
 0xe2d   :  { %v461_v51 = vmul.f32 %v1241_v50, %v459_v49  ;;  %vm466_vm12 = vweird.f32 %v1241_v50 }
 0xe2e   :  { %vm467_vm14 = vmor %vm465_vm13, %vm466_vm12 }
 0xe2f   :  { %v462_v52 = vsub.f32 1.0, %v461_v51 }
 0xe31   :  { %v463_v53 = vmul.f32 %v1241_v50, %v462_v52 }
 0xe33   :  { %v464_v54 = vadd.f32 %v1241_v50, %v463_v53 }
 0xe35   :  { %v468_v57 = vsel %vm467_vm14, %v1241_v50, %v464_v54 }
 0xe36   :  { %v473_v60 = vsel %vm470_vm15, %v472_v58, %v468_v57  ;;  %v630_v57 = vld [vmem:[%s1681_s0 + $0x9] sm:$0x1] }
 0xe37   :  { %v476_v62 = vmul.f32 %v473_v60, %v420_v38 }
 0xe94   :  { %v479_v59 = vpop.permute.xlu1 %478 }
 0xe95   :  { %v481_v61 = vmul.f32 %v479_v59, %v473_v60 }
 0xe97   :  { %483 = vrot.lane.b32.xlu2 %v481_v61, %s1392_s7 }
 0xef1   :  { %v484_v63 = vpop.permute.xlu2 %483 }
 0xef2   :  { %v486_v4 = vadd.f32 %v484_v63, %v476_v62 }
 0xef4   :  { %1242 = vtanh.f32 %v486_v4 }
 0xefa   :  { %v1243_v5 = vpop.eup %1242 }
 0xefb   :  { %489 = vrot.lane.b32.xlu0 %v1243_v5, %s1392_s7 }
 0xf6d   :  { %v490_v6 = vpop.permute.xlu0 %489 }
 0xf6e   :  { %v492_v7 = vmul.f32 %v490_v6, %v473_v60 }
 0xf70   :  { %494 = vrot.lane.b32.xlu1 %v492_v7, %s1393_s3 }
 0xfe2   :  { %v495_v8 = vpop.permute.xlu1 %494 }
 0xfe3   :  { %497 = vst.msk [vmem:[#allocation4 + $0x6] sm:$0x1] %vm100_vm5, %v495_v8  ;;  %1161 = vmatmul.msk.f32.vlgmr.msrb.gmra.mxu3 %vm29_vm0, %v495_v8 }
 0xfe4   :  { %1041 = vmatpush.msrb.mxu3 %v1438_v0 }
 0xfe6   :  { %1042 = vmatpush.msrb.mxu3 %v1443_v1 }
 0xfe8   :  { %1043 = vmatpush.msrb.mxu3 %v1450_v2 }
 0xfea   :  { %1044 = vmatpush.msrb.mxu3 %v1459_v3 }
0x1066   :  { %v518_v10 = vpop.f32.mrf.mxu3 }
0x1067   :  { %v521_v11 = vadd.f32 %v518_v10, %v498_v9 }
0x1069   :  { %1244 = vtanh.f32 %v521_v11  ;;  %v1162_v13 = vmul.f32 -1.442695, %v521_v11 }
0x106b   :  { %1246 = vpow2.f32 %v1162_v13 }
0x106f   :  { %v1245_v12 = vpop.eup %1244 }
0x1070   :  { %544 = vrot.lane.b32.xlu2 %v1245_v12, %s1392_s7 }
0x1071   :  { %v1247_v14 = vpop.eup %1246 }
0x1072   :  { %v525_v0 = vadd.f32 1.0, %v1247_v14 }
0x1074   :  { %1248 = vrcp.f32 %v525_v0  ;;  %v537_v17 = vand.u32 2147483648, %v525_v0  ;;  %vm531_vm2 = vweird.f32 %v525_v0  ;;  %v535_v18 = vand.u32 2147483647, %v525_v0 }
0x1076   :  { %v538_v20 = vor.u32 1.1754944e-38, %v537_v17  ;;  %vm536_vm4 = vcmp.eq.f32.partialorder %v535_v18, 8.507059e+37 }
0x107a   :  { %v1249_v1 = vpop.eup %1248 }
0x107b   :  { %v527_v15 = vmul.f32 %v1249_v1, %v525_v0  ;;  %vm532_vm1 = vweird.f32 %v1249_v1 }
0x107c   :  { %vm533_vm3 = vmor %vm531_vm2, %vm532_vm1 }
0x107d   :  { %v528_v2 = vsub.f32 1.0, %v527_v15 }
0x107f   :  { %v529_v16 = vmul.f32 %v1249_v1, %v528_v2 }
0x1081   :  { %v530_v3 = vadd.f32 %v1249_v1, %v529_v16 }
0x1083   :  { %v534_v19 = vsel %vm533_vm3, %v1249_v1, %v530_v3 }
0x1084   :  { %v539_v22 = vsel %vm536_vm4, %v538_v20, %v534_v19  ;;  %v696_v19 = vld [vmem:[%s1681_s0 + $0xa] sm:$0x1] }
0x1085   :  { %v542_v24 = vmul.f32 %v539_v22, %v486_v4 }
0x10ca   :  { %v545_v21 = vpop.permute.xlu2 %544 }
0x10cb   :  { %v547_v23 = vmul.f32 %v545_v21, %v539_v22 }
0x10cd   :  { %549 = vrot.lane.b32.xlu0 %v547_v23, %s1392_s7 }
0x113f   :  { %v550_v25 = vpop.permute.xlu0 %549 }
0x1140   :  { %v552_v26 = vadd.f32 %v550_v25, %v542_v24 }
0x1142   :  { %1250 = vtanh.f32 %v552_v26 }
0x1148   :  { %v1251_v27 = vpop.eup %1250 }
0x1149   :  { %555 = vrot.lane.b32.xlu1 %v1251_v27, %s1392_s7 }
0x11bb   :  { %v556_v28 = vpop.permute.xlu1 %555 }
0x11bc   :  { %v558_v29 = vmul.f32 %v556_v28, %v539_v22 }
0x11be   :  { %560 = vrot.lane.b32.xlu2 %v558_v29, %s1393_s3 }
0x1218   :  { %v561_v30 = vpop.permute.xlu2 %560 }
0x1219   :  { %563 = vst.msk [vmem:[#allocation4 + $0x7] sm:$0x1] %vm100_vm5, %v561_v30  ;;  %1163 = vmatmul.msk.f32.vlgmr.msra.gmra.mxu0 %vm29_vm0, %v561_v30 }
0x1296   :  { %v584_v32 = vpop.f32.mrf.mxu0 }
0x1297   :  { %v587_v33 = vadd.f32 %v584_v32, %v564_v31 }
0x1299   :  { %1252 = vtanh.f32 %v587_v33  ;;  %v1164_v35 = vmul.f32 -1.442695, %v587_v33 }
0x129b   :  { %1254 = vpow2.f32 %v1164_v35 }
0x129f   :  { %v1253_v34 = vpop.eup %1252 }
0x12a0   :  { %610 = vrot.lane.b32.xlu0 %v1253_v34, %s1392_s7 }
0x12a1   :  { %v1255_v36 = vpop.eup %1254 }
0x12a2   :  { %v591_v37 = vadd.f32 1.0, %v1255_v36 }
0x12a4   :  { %1256 = vrcp.f32 %v591_v37  ;;  %v603_v43 = vand.u32 2147483648, %v591_v37  ;;  %vm597_vm7 = vweird.f32 %v591_v37  ;;  %v601_v44 = vand.u32 2147483647, %v591_v37 }
0x12a6   :  { %v604_v46 = vor.u32 1.1754944e-38, %v603_v43  ;;  %vm602_vm9 = vcmp.eq.f32.partialorder %v601_v44, 8.507059e+37 }
0x12aa   :  { %v1257_v38 = vpop.eup %1256 }
0x12ab   :  { %v593_v39 = vmul.f32 %v1257_v38, %v591_v37  ;;  %vm598_vm6 = vweird.f32 %v1257_v38 }
0x12ac   :  { %vm599_vm8 = vmor %vm597_vm7, %vm598_vm6 }
0x12ad   :  { %v594_v40 = vsub.f32 1.0, %v593_v39 }
0x12af   :  { %v595_v41 = vmul.f32 %v1257_v38, %v594_v40 }
0x12b1   :  { %v596_v42 = vadd.f32 %v1257_v38, %v595_v41 }
0x12b3   :  { %v600_v45 = vsel %vm599_vm8, %v1257_v38, %v596_v42 }
0x12b4   :  { %v605_v48 = vsel %vm602_vm9, %v604_v46, %v600_v45  ;;  %v762_v45 = vld [vmem:[%s1681_s0 + $0xb] sm:$0x1] }
0x12b5   :  { %v608_v50 = vmul.f32 %v605_v48, %v552_v26 }
0x1312   :  { %v611_v47 = vpop.permute.xlu0 %610 }
0x1313   :  { %v613_v49 = vmul.f32 %v611_v47, %v605_v48 }
0x1315   :  { %615 = vrot.lane.b32.xlu1 %v613_v49, %s1392_s7 }
0x1387   :  { %v616_v51 = vpop.permute.xlu1 %615 }
0x1388   :  { %v618_v52 = vadd.f32 %v616_v51, %v608_v50 }
0x138a   :  { %1258 = vtanh.f32 %v618_v52 }
0x1390   :  { %v1259_v53 = vpop.eup %1258 }
0x1391   :  { %621 = vrot.lane.b32.xlu2 %v1259_v53, %s1392_s7 }
0x13eb   :  { %v622_v54 = vpop.permute.xlu2 %621 }
0x13ec   :  { %v624_v55 = vmul.f32 %v622_v54, %v605_v48 }
0x13ee   :  { %626 = vrot.lane.b32.xlu0 %v624_v55, %s1393_s3 }
0x1460   :  { %v627_v56 = vpop.permute.xlu0 %626 }
0x1461   :  { %629 = vst.msk [vmem:[#allocation4 + $0x8] sm:$0x1] %vm100_vm5, %v627_v56  ;;  %1165 = vmatmul.msk.f32.vlgmr.msra.gmra.mxu1 %vm29_vm0, %v627_v56 }
0x14de   :  { %v650_v58 = vpop.f32.mrf.mxu1 }
0x14df   :  { %v653_v59 = vadd.f32 %v650_v58, %v630_v57 }
0x14e1   :  { %1260 = vtanh.f32 %v653_v59  ;;  %v1166_v61 = vmul.f32 -1.442695, %v653_v59 }
0x14e3   :  { %1262 = vpow2.f32 %v1166_v61 }
0x14e7   :  { %v1261_v60 = vpop.eup %1260 }
0x14e8   :  { %676 = vrot.lane.b32.xlu1 %v1261_v60, %s1392_s7 }
0x14e9   :  { %v1263_v62 = vpop.eup %1262 }
0x14ea   :  { %v657_v63 = vadd.f32 1.0, %v1263_v62 }
0x14ec   :  { %1264 = vrcp.f32 %v657_v63  ;;  %v669_v9 = vand.u32 2147483648, %v657_v63  ;;  %vm663_vm11 = vweird.f32 %v657_v63  ;;  %v667_v10 = vand.u32 2147483647, %v657_v63 }
0x14ee   :  { %v670_v12 = vor.u32 1.1754944e-38, %v669_v9  ;;  %vm668_vm13 = vcmp.eq.f32.partialorder %v667_v10, 8.507059e+37 }
0x14f2   :  { %v1265_v4 = vpop.eup %1264 }
0x14f3   :  { %v659_v5 = vmul.f32 %v1265_v4, %v657_v63  ;;  %vm664_vm10 = vweird.f32 %v1265_v4 }
0x14f4   :  { %vm665_vm12 = vmor %vm663_vm11, %vm664_vm10 }
0x14f5   :  { %v660_v6 = vsub.f32 1.0, %v659_v5 }
0x14f7   :  { %v661_v7 = vmul.f32 %v1265_v4, %v660_v6 }
0x14f9   :  { %v662_v8 = vadd.f32 %v1265_v4, %v661_v7 }
0x14fb   :  { %v666_v11 = vsel %vm665_vm12, %v1265_v4, %v662_v8 }
0x14fc   :  { %v671_v14 = vsel %vm668_vm13, %v670_v12, %v666_v11  ;;  %v828_v11 = vld [vmem:[%s1681_s0 + $0xc] sm:$0x1] }
0x14fd   :  { %v674_v1 = vmul.f32 %v671_v14, %v618_v52 }
0x155a   :  { %v677_v13 = vpop.permute.xlu1 %676 }
0x155b   :  { %v679_v0 = vmul.f32 %v677_v13, %v671_v14 }
0x155d   :  { %681 = vrot.lane.b32.xlu2 %v679_v0, %s1392_s7 }
0x15b7   :  { %v682_v15 = vpop.permute.xlu2 %681 }
0x15b8   :  { %v684_v2 = vadd.f32 %v682_v15, %v674_v1 }
0x15ba   :  { %1266 = vtanh.f32 %v684_v2 }
0x15c0   :  { %v1267_v16 = vpop.eup %1266 }
0x15c1   :  { %687 = vrot.lane.b32.xlu0 %v1267_v16, %s1392_s7 }
0x1633   :  { %v688_v3 = vpop.permute.xlu0 %687 }
0x1634   :  { %v690_v17 = vmul.f32 %v688_v3, %v671_v14 }
0x1636   :  { %692 = vrot.lane.b32.xlu1 %v690_v17, %s1393_s3 }
0x16a8   :  { %v693_v18 = vpop.permute.xlu1 %692 }
0x16a9   :  { %695 = vst.msk [vmem:[#allocation4 + $0x9] sm:$0x1] %vm100_vm5, %v693_v18  ;;  %1167 = vmatmul.msk.f32.vlgmr.msra.gmra.mxu2 %vm29_vm0, %v693_v18 }
0x172c   :  { %v716_v20 = vpop.f32.mrf.mxu2 }
0x172d   :  { %v719_v21 = vadd.f32 %v716_v20, %v696_v19 }
0x172f   :  { %1268 = vtanh.f32 %v719_v21  ;;  %v1168_v23 = vmul.f32 -1.442695, %v719_v21 }
0x1731   :  { %1270 = vpow2.f32 %v1168_v23 }
0x1735   :  { %v1269_v22 = vpop.eup %1268 }
0x1736   :  { %742 = vrot.lane.b32.xlu2 %v1269_v22, %s1392_s7 }
0x1737   :  { %v1271_v24 = vpop.eup %1270 }
0x1738   :  { %v723_v25 = vadd.f32 1.0, %v1271_v24 }
0x173a   :  { %1272 = vrcp.f32 %v723_v25  ;;  %v735_v31 = vand.u32 2147483648, %v723_v25  ;;  %vm729_vm15 = vweird.f32 %v723_v25  ;;  %v733_v32 = vand.u32 2147483647, %v723_v25 }
0x173c   :  { %v736_v34 = vor.u32 1.1754944e-38, %v735_v31  ;;  %vm734_vm2 = vcmp.eq.f32.partialorder %v733_v32, 8.507059e+37 }
0x1740   :  { %v1273_v26 = vpop.eup %1272 }
0x1741   :  { %v725_v27 = vmul.f32 %v1273_v26, %v723_v25  ;;  %vm730_vm14 = vweird.f32 %v1273_v26 }
0x1742   :  { %vm731_vm1 = vmor %vm729_vm15, %vm730_vm14 }
0x1743   :  { %v726_v28 = vsub.f32 1.0, %v725_v27 }
0x1745   :  { %v727_v29 = vmul.f32 %v1273_v26, %v726_v28 }
0x1747   :  { %v728_v30 = vadd.f32 %v1273_v26, %v727_v29 }
0x1749   :  { %v732_v33 = vsel %vm731_vm1, %v1273_v26, %v728_v30 }
0x174a   :  { %v737_v36 = vsel %vm734_vm2, %v736_v34, %v732_v33  ;;  %v894_v33 = vld [vmem:[%s1681_s0 + $0xd] sm:$0x1] }
0x174b   :  { %v740_v38 = vmul.f32 %v737_v36, %v684_v2 }
0x1790   :  { %v743_v35 = vpop.permute.xlu2 %742 }
0x1791   :  { %v745_v37 = vmul.f32 %v743_v35, %v737_v36 }
0x1793   :  { %747 = vrot.lane.b32.xlu0 %v745_v37, %s1392_s7 }
0x1805   :  { %v748_v39 = vpop.permute.xlu0 %747 }
0x1806   :  { %v750_v40 = vadd.f32 %v748_v39, %v740_v38 }
0x1808   :  { %1274 = vtanh.f32 %v750_v40 }
0x180e   :  { %v1275_v41 = vpop.eup %1274 }
0x180f   :  { %753 = vrot.lane.b32.xlu1 %v1275_v41, %s1392_s7 }
0x1881   :  { %v754_v42 = vpop.permute.xlu1 %753 }
0x1882   :  { %v756_v43 = vmul.f32 %v754_v42, %v737_v36 }
0x1884   :  { %758 = vrot.lane.b32.xlu2 %v756_v43, %s1393_s3 }
0x18de   :  { %v759_v44 = vpop.permute.xlu2 %758 }
0x18df   :  { %761 = vst.msk [vmem:[#allocation4 + $0xa] sm:$0x1] %vm100_vm5, %v759_v44  ;;  %1169 = vmatmul.msk.f32.vlgmr.msra.gmra.mxu3 %vm29_vm0, %v759_v44 }
0x1962   :  { %v782_v46 = vpop.f32.mrf.mxu3 }
0x1963   :  { %v785_v47 = vadd.f32 %v782_v46, %v762_v45 }
0x1965   :  { %1276 = vtanh.f32 %v785_v47  ;;  %v1170_v49 = vmul.f32 -1.442695, %v785_v47 }
0x1967   :  { %1278 = vpow2.f32 %v1170_v49 }
0x196b   :  { %v1277_v48 = vpop.eup %1276 }
0x196c   :  { %808 = vrot.lane.b32.xlu0 %v1277_v48, %s1392_s7 }
0x196d   :  { %v1279_v50 = vpop.eup %1278 }
0x196e   :  { %v789_v51 = vadd.f32 1.0, %v1279_v50 }
0x1970   :  { %1280 = vrcp.f32 %v789_v51  ;;  %v801_v57 = vand.u32 2147483648, %v789_v51  ;;  %vm795_vm4 = vweird.f32 %v789_v51  ;;  %v799_v58 = vand.u32 2147483647, %v789_v51 }
0x1972   :  { %v802_v60 = vor.u32 1.1754944e-38, %v801_v57  ;;  %vm800_vm7 = vcmp.eq.f32.partialorder %v799_v58, 8.507059e+37 }
0x1976   :  { %v1281_v52 = vpop.eup %1280 }
0x1977   :  { %v791_v53 = vmul.f32 %v1281_v52, %v789_v51  ;;  %vm796_vm3 = vweird.f32 %v1281_v52 }
0x1978   :  { %vm797_vm6 = vmor %vm795_vm4, %vm796_vm3 }
0x1979   :  { %v792_v54 = vsub.f32 1.0, %v791_v53 }
0x197b   :  { %v793_v55 = vmul.f32 %v1281_v52, %v792_v54 }
0x197d   :  { %v794_v56 = vadd.f32 %v1281_v52, %v793_v55 }
0x197f   :  { %v798_v59 = vsel %vm797_vm6, %v1281_v52, %v794_v56 }
0x1980   :  { %v803_v62 = vsel %vm800_vm7, %v802_v60, %v798_v59  ;;  %v960_v59 = vld [vmem:[%s1681_s0 + $0xe] sm:$0x1] }
0x1981   :  { %v806_v4 = vmul.f32 %v803_v62, %v750_v40 }
0x19de   :  { %v809_v61 = vpop.permute.xlu0 %808 }
0x19df   :  { %v811_v63 = vmul.f32 %v809_v61, %v803_v62 }
0x19e1   :  { %813 = vrot.lane.b32.xlu1 %v811_v63, %s1392_s7 }
0x1a53   :  { %v814_v5 = vpop.permute.xlu1 %813 }
0x1a54   :  { %v816_v6 = vadd.f32 %v814_v5, %v806_v4 }
0x1a56   :  { %1282 = vtanh.f32 %v816_v6 }
0x1a5c   :  { %v1283_v7 = vpop.eup %1282 }
0x1a5d   :  { %819 = vrot.lane.b32.xlu2 %v1283_v7, %s1392_s7 }
0x1ab7   :  { %v820_v8 = vpop.permute.xlu2 %819 }
0x1ab8   :  { %v822_v9 = vmul.f32 %v820_v8, %v803_v62 }
0x1aba   :  { %824 = vrot.lane.b32.xlu0 %v822_v9, %s1393_s3 }
0x1b2c   :  { %v825_v10 = vpop.permute.xlu0 %824 }
0x1b2d   :  { %827 = vst.msk [vmem:[#allocation4 + $0xb] sm:$0x1] %vm100_vm5, %v825_v10  ;;  %1171 = vmatmul.msk.f32.vlgmr.msrb.gmra.mxu0 %vm29_vm0, %v825_v10 }
0x1baa   :  { %v848_v12 = vpop.f32.mrf.mxu0 }
0x1bab   :  { %v851_v13 = vadd.f32 %v848_v12, %v828_v11 }
0x1bad   :  { %1284 = vtanh.f32 %v851_v13  ;;  %v1172_v0 = vmul.f32 -1.442695, %v851_v13 }
0x1baf   :  { %1286 = vpow2.f32 %v1172_v0 }
0x1bb3   :  { %v1285_v14 = vpop.eup %1284 }
0x1bb4   :  { %874 = vrot.lane.b32.xlu1 %v1285_v14, %s1392_s7 }
0x1bb5   :  { %v1287_v1 = vpop.eup %1286 }
0x1bb6   :  { %v855_v15 = vadd.f32 1.0, %v1287_v1 }
0x1bb8   :  { %1288 = vrcp.f32 %v855_v15  ;;  %v867_v19 = vand.u32 2147483648, %v855_v15  ;;  %vm861_vm9 = vweird.f32 %v855_v15  ;;  %v865_v20 = vand.u32 2147483647, %v855_v15 }
0x1bba   :  { %v868_v22 = vor.u32 1.1754944e-38, %v867_v19  ;;  %vm866_vm11 = vcmp.eq.f32.partialorder %v865_v20, 8.507059e+37 }
0x1bbe   :  { %v1289_v2 = vpop.eup %1288 }
0x1bbf   :  { %v857_v16 = vmul.f32 %v1289_v2, %v855_v15  ;;  %vm862_vm8 = vweird.f32 %v1289_v2 }
0x1bc0   :  { %vm863_vm10 = vmor %vm861_vm9, %vm862_vm8 }
0x1bc1   :  { %v858_v3 = vsub.f32 1.0, %v857_v16 }
0x1bc3   :  { %v859_v17 = vmul.f32 %v1289_v2, %v858_v3 }
0x1bc5   :  { %v860_v18 = vadd.f32 %v1289_v2, %v859_v17 }
0x1bc7   :  { %v864_v21 = vsel %vm863_vm10, %v1289_v2, %v860_v18 }
0x1bc8   :  { %v869_v24 = vsel %vm866_vm11, %v868_v22, %v864_v21  ;;  %v1026_v21 = vld [vmem:[%s1681_s0 + $0xf] sm:$0x1]  ;;  %s1394_s0 = smov 96  }
0x1bc9   :  { %v872_v26 = vmul.f32 %v869_v24, %v816_v6 }
0x1c26   :  { %v875_v23 = vpop.permute.xlu1 %874 }
0x1c27   :  { %v877_v25 = vmul.f32 %v875_v23, %v869_v24 }
0x1c29   :  { %879 = vrot.lane.b32.xlu2 %v877_v25, %s1392_s7 }
0x1c83   :  { %v880_v27 = vpop.permute.xlu2 %879 }
0x1c84   :  { %v882_v28 = vadd.f32 %v880_v27, %v872_v26 }
0x1c86   :  { %1290 = vtanh.f32 %v882_v28 }
0x1c8c   :  { %v1291_v29 = vpop.eup %1290 }
0x1c8d   :  { %885 = vrot.lane.b32.xlu0 %v1291_v29, %s1392_s7 }
0x1cff   :  { %v886_v30 = vpop.permute.xlu0 %885 }
0x1d00   :  { %v888_v31 = vmul.f32 %v886_v30, %v869_v24 }
0x1d02   :  { %890 = vrot.lane.b32.xlu1 %v888_v31, %s1393_s3 }
0x1d74   :  { %v891_v32 = vpop.permute.xlu1 %890 }
0x1d75   :  { %893 = vst.msk [vmem:[#allocation4 + $0xc] sm:$0x1] %vm100_vm5, %v891_v32  ;;  %1173 = vmatmul.msk.f32.vlgmr.msrb.gmra.mxu1 %vm29_vm0, %v891_v32 }
0x1df2   :  { %v914_v34 = vpop.f32.mrf.mxu1 }
0x1df3   :  { %v917_v35 = vadd.f32 %v914_v34, %v894_v33 }
0x1df5   :  { %1292 = vtanh.f32 %v917_v35  ;;  %v1174_v37 = vmul.f32 -1.442695, %v917_v35 }
0x1df7   :  { %1294 = vpow2.f32 %v1174_v37 }
0x1dfb   :  { %v1293_v36 = vpop.eup %1292 }
0x1dfc   :  { %940 = vrot.lane.b32.xlu2 %v1293_v36, %s1392_s7 }
0x1dfd   :  { %v1295_v38 = vpop.eup %1294 }
0x1dfe   :  { %v921_v39 = vadd.f32 1.0, %v1295_v38 }
0x1e00   :  { %1296 = vrcp.f32 %v921_v39  ;;  %v933_v45 = vand.u32 2147483648, %v921_v39  ;;  %vm927_vm13 = vweird.f32 %v921_v39  ;;  %v931_v46 = vand.u32 2147483647, %v921_v39 }
0x1e02   :  { %v934_v48 = vor.u32 1.1754944e-38, %v933_v45  ;;  %vm932_vm15 = vcmp.eq.f32.partialorder %v931_v46, 8.507059e+37 }
0x1e06   :  { %v1297_v40 = vpop.eup %1296 }
0x1e07   :  { %v923_v41 = vmul.f32 %v1297_v40, %v921_v39  ;;  %vm928_vm12 = vweird.f32 %v1297_v40 }
0x1e08   :  { %vm929_vm14 = vmor %vm927_vm13, %vm928_vm12 }
0x1e09   :  { %v924_v42 = vsub.f32 1.0, %v923_v41 }
0x1e0b   :  { %v925_v43 = vmul.f32 %v1297_v40, %v924_v42 }
0x1e0d   :  { %v926_v44 = vadd.f32 %v1297_v40, %v925_v43 }
0x1e0f   :  { %v930_v47 = vsel %vm929_vm14, %v1297_v40, %v926_v44 }
0x1e10   :  { %v935_v50 = vsel %vm932_vm15, %v934_v48, %v930_v47 }
0x1e11   :  { %v938_v52 = vmul.f32 %v935_v50, %v882_v28 }
0x1e56   :  { %v941_v49 = vpop.permute.xlu2 %940 }
0x1e57   :  { %v943_v51 = vmul.f32 %v941_v49, %v935_v50 }
0x1e59   :  { %945 = vrot.lane.b32.xlu0 %v943_v51, %s1392_s7 }
0x1ecb   :  { %v946_v53 = vpop.permute.xlu0 %945 }
0x1ecc   :  { %v948_v54 = vadd.f32 %v946_v53, %v938_v52 }
0x1ece   :  { %1298 = vtanh.f32 %v948_v54 }
0x1ed4   :  { %v1299_v55 = vpop.eup %1298 }
0x1ed5   :  { %951 = vrot.lane.b32.xlu1 %v1299_v55, %s1392_s7 }
0x1f47   :  { %v952_v56 = vpop.permute.xlu1 %951 }
0x1f48   :  { %v954_v57 = vmul.f32 %v952_v56, %v935_v50 }
0x1f4a   :  { %956 = vrot.lane.b32.xlu2 %v954_v57, %s1393_s3 }
0x1fa4   :  { %v957_v58 = vpop.permute.xlu2 %956 }
0x1fa5   :  { %959 = vst.msk [vmem:[#allocation4 + $0xd] sm:$0x1] %vm100_vm5, %v957_v58  ;;  %1175 = vmatmul.msk.f32.vlgmr.msrb.gmra.mxu2 %vm29_vm0, %v957_v58 }
0x2028   :  { %v980_v60 = vpop.f32.mrf.mxu2 }
0x2029   :  { %v983_v61 = vadd.f32 %v980_v60, %v960_v59 }
0x202b   :  { %1300 = vtanh.f32 %v983_v61  ;;  %v1176_v63 = vmul.f32 -1.442695, %v983_v61 }
0x202d   :  { %1302 = vpow2.f32 %v1176_v63 }
0x2031   :  { %v1301_v62 = vpop.eup %1300 }
0x2032   :  { %1006 = vrot.lane.b32.xlu0 %v1301_v62, %s1392_s7 }
0x2033   :  { %v1303_v4 = vpop.eup %1302 }
0x2034   :  { %v987_v5 = vadd.f32 1.0, %v1303_v4 }
0x2036   :  { %1304 = vrcp.f32 %v987_v5  ;;  %v999_v11 = vand.u32 2147483648, %v987_v5  ;;  %vm993_vm2 = vweird.f32 %v987_v5  ;;  %v997_v12 = vand.u32 2147483647, %v987_v5 }
0x2038   :  { %v1000_v14 = vor.u32 1.1754944e-38, %v999_v11  ;;  %vm998_vm4 = vcmp.eq.f32.partialorder %v997_v12, 8.507059e+37 }
0x203c   :  { %v1305_v6 = vpop.eup %1304 }
0x203d   :  { %v989_v7 = vmul.f32 %v1305_v6, %v987_v5  ;;  %vm994_vm1 = vweird.f32 %v1305_v6 }
0x203e   :  { %vm995_vm3 = vmor %vm993_vm2, %vm994_vm1 }
0x203f   :  { %v990_v8 = vsub.f32 1.0, %v989_v7 }
0x2041   :  { %v991_v9 = vmul.f32 %v1305_v6, %v990_v8 }
0x2043   :  { %v992_v10 = vadd.f32 %v1305_v6, %v991_v9 }
0x2045   :  { %v996_v13 = vsel %vm995_vm3, %v1305_v6, %v992_v10 }
0x2046   :  { %v1001_v1 = vsel %vm998_vm4, %v1000_v14, %v996_v13 }
0x2047   :  { %v1004_v2 = vmul.f32 %v1001_v1, %v948_v54 }
0x20a4   :  { %v1007_v0 = vpop.permute.xlu0 %1006 }
0x20a5   :  { %v1009_v15 = vmul.f32 %v1007_v0, %v1001_v1 }
0x20a7   :  { %1011 = vrot.lane.b32.xlu1 %v1009_v15, %s1392_s7 }
0x2119   :  { %v1012_v16 = vpop.permute.xlu1 %1011 }
0x211a   :  { %v1014_v3 = vadd.f32 %v1012_v16, %v1004_v2 }
0x211c   :  { %1306 = vtanh.f32 %v1014_v3 }
0x2122   :  { %v1307_v17 = vpop.eup %1306 }
0x2123   :  { %1017 = vrot.lane.b32.xlu2 %v1307_v17, %s1392_s7 }
0x217d   :  { %v1018_v18 = vpop.permute.xlu2 %1017 }
0x217e   :  { %v1020_v19 = vmul.f32 %v1018_v18, %v1001_v1 }
0x2180   :  { %1022 = vrot.lane.b32.xlu0 %v1020_v19, %s1393_s3 }
0x21f2   :  { %v1023_v20 = vpop.permute.xlu0 %1022 }
0x21f3   :  { %1025 = vst.msk [vmem:[#allocation4 + $0xe] sm:$0x1] %vm100_vm5, %v1023_v20  ;;  %1177 = vmatmul.msk.f32.vlgmr.msrb.gmra.mxu3 %vm29_vm0, %v1023_v20 }
0x2276   :  { %v1046_v22 = vpop.f32.mrf.mxu3 }
0x2277   :  { %v1049_v23 = vadd.f32 %v1046_v22, %v1026_v21 }
0x2279   :  { %1308 = vtanh.f32 %v1049_v23  ;;  %v1178_v25 = vmul.f32 -1.442695, %v1049_v23 }
0x227b   :  { %1310 = vpow2.f32 %v1178_v25 }
0x227f   :  { %v1309_v24 = vpop.eup %1308 }
0x2280   :  { %1072 = vrot.lane.b32.xlu1 %v1309_v24, %s1392_s7 }
0x2281   :  { %v1311_v26 = vpop.eup %1310 }
0x2282   :  { %v1053_v27 = vadd.f32 1.0, %v1311_v26 }
0x2284   :  { %1312 = vrcp.f32 %v1053_v27  ;;  %v1065_v33 = vand.u32 2147483648, %v1053_v27  ;;  %vm1059_vm6 = vweird.f32 %v1053_v27  ;;  %v1063_v34 = vand.u32 2147483647, %v1053_v27 }
0x2286   :  { %v1066_v36 = vor.u32 1.1754944e-38, %v1065_v33  ;;  %vm1064_vm8 = vcmp.eq.f32.partialorder %v1063_v34, 8.507059e+37 }
0x228a   :  { %v1313_v28 = vpop.eup %1312 }
0x228b   :  { %v1055_v29 = vmul.f32 %v1313_v28, %v1053_v27  ;;  %vm1060_vm0 = vweird.f32 %v1313_v28 }
0x228c   :  { %vm1061_vm7 = vmor %vm1059_vm6, %vm1060_vm0 }
0x228d   :  { %v1056_v30 = vsub.f32 1.0, %v1055_v29 }
0x228f   :  { %v1057_v31 = vmul.f32 %v1313_v28, %v1056_v30 }
0x2291   :  { %v1058_v32 = vadd.f32 %v1313_v28, %v1057_v31 }
0x2293   :  { %v1062_v35 = vsel %vm1061_vm7, %v1313_v28, %v1058_v32 }
0x2294   :  { %v1067_v38 = vsel %vm1064_vm8, %v1066_v36, %v1062_v35 }
0x2295   :  { %v1070_v40 = vmul.f32 %v1067_v38, %v1014_v3 }
0x22f2   :  { %v1073_v37 = vpop.permute.xlu1 %1072 }
0x22f3   :  { %v1075_v39 = vmul.f32 %v1073_v37, %v1067_v38 }
0x22f5   :  { %1077 = vrot.lane.b32.xlu2 %v1075_v39, %s1392_s7 }
0x234f   :  { %v1078_v41 = vpop.permute.xlu2 %1077 }
0x2350   :  { %v1080_v42 = vadd.f32 %v1078_v41, %v1070_v40 }
0x2352   :  { %1314 = vtanh.f32 %v1080_v42  ;;  %1094 = vrot.lane.b32.xlu2 %v1080_v42, %s1394_s0 }
0x2358   :  { %v1315_v43 = vpop.eup %1314 }
0x2359   :  { %1083 = vrot.lane.b32.xlu0 %v1315_v43, %s1392_s7  ;;  %s1397_s7 = smov [#allocation8]  }
0x235a   :  { %s1127_s25 = sshll.u32 %s1397_s7, 4  ;;  %s1128_s25 = int_to_ptr.vmem [resolvable:$true] %s1127_s25 }
0x23ac   :  { %v1095_v44 = vpop.permute.xlu2 %1094 }
0x23ad   :  { %1097 = vst.msk [vmem:[#allocation8] sm:$0x1] %vm100_vm5, %v1095_v44 }
0x23cb   :  { %v1084_v45 = vpop.permute.xlu0 %1083 }
0x23cc   :  { %v1086_v46 = vmul.f32 %v1084_v45, %v1067_v38 }
0x23ce   :  { %1088 = vrot.lane.b32.xlu1 %v1086_v46, %s1393_s3  ;;  %s1129_s3 = sshll.u32 %s1687_s6, 4  ;;  %s1130_s3 = int_to_ptr.hbm [resolvable:$true] %s1129_s3 }
0x2440   :  { %v1089_v47 = vpop.permute.xlu1 %1088 }
0x2441   :  { %1091 = vst.msk [vmem:[#allocation4 + $0xf] sm:$0x1] %vm100_vm5, %v1089_v47 }
0x2442   :  { %1092 = vst.msk [vmem:[#allocation6] sm:$0x1] %vm100_vm5, %v1089_v47  ;;  %1110 = dma.vmem_to_hbm [thread:$0]  %s1103_s16, 256, %s1105_s19, [#allocation5], %s1398_s4, %s1398_s4, %s1399_s28  }
0x2443   :  { %1121 = dma.vmem_to_hbm [thread:$0]  %s1117_s21, 16, %s1119_s24, [#allocation7]  }
0x2444   :  { %1132 = dma.vmem_to_hbm [thread:$0]  %s1128_s25, 16, %s1130_s3, [#allocation7]  }
0x2445   :  { %1388 = dma.done.wait [#allocation5], 256  }
0x2446   :  { %1389 = vsyncadd [#allocation5], 4294967040 }
0x2447   :  { %1390 = dma.done.wait [#allocation7], 32  }
0x2448   :  { %1391 = vsyncadd [#allocation7], 4294967264 }
0x2449   :  { %1145 = vsyncpa [#allocation5], 1 }
0x244a   :  { %1146 = vsyncpa [#allocation7], 1 }

</bundles_post_ra>
